<compile_context>
chip_gen: v7x
topology: tpu7x:2x2x1
jax: 0.10.0
libtpu: 0.0.40
codegen_flags: <defaults>
</compile_context>

<pallas_src>
import functools
import math

import jax
import jax.numpy as jnp
from jax.experimental import pallas as pl
from jax.experimental.pallas import tpu as pltpu

LN_EPS = 1e-5  # RoBERTa layer_norm_eps

# small synthetic RoBERTa config
CFG = dict(vocab_size=100, hidden=32, layers=2, heads=4,
           intermediate=64, max_pos=40, pad_id=1)


# ----------------------------- kernel helpers -------------------------------

def _layernorm(x, g, b):
    """LayerNorm over last dim in f32.  g/b are [1, H]."""
    mu = jnp.mean(x, axis=-1, keepdims=True)
    var = jnp.mean((x - mu) ** 2, axis=-1, keepdims=True)
    return (x - mu) * jax.lax.rsqrt(var + LN_EPS) * g + b


# ------------------------------ fused kernel --------------------------------

def _fused_encoder_kernel(emb_ref, mask_ref, embg_ref, embb_ref,
                          wqkv_ref, bqkv_ref, wo_ref, bo_ref,
                          ln1g_ref, ln1b_ref,
                          wi_ref, bi_ref, wo2_ref, bo2_ref,
                          ln2g_ref, ln2b_ref,
                          pw_ref, pb_ref,
                          out_ref,
                          h_ref, tok0_ref, *, S, nH, d, L):
    """Grid = (B, L).  One grid step = one encoder layer for one batch row.

    emb:[S,H] pre-LN embeddings   mask:[1,S] key mask (1=keep, 0=pad)
    per-layer weights are the l-th slice of the stacked [L,...] arrays.
    out:[L+1,H] pooled (tanh(dense(token0))) vectors of every hidden state.
    """
    H = nH * d
    l = pl.program_id(1)

    # --- layer 0 of this batch row: embedding LayerNorm + hidden-state-0 pool row
    @pl.when(l == 0)
    def _():
        h0 = _layernorm(emb_ref[...].astype(jnp.float32),
                        embg_ref[...], embb_ref[...])
        h_ref[...] = h0
        tok0_ref[pl.ds(0, 1), :] = h0[0:1, :]

    x = h_ref[...]                                     # [S, H] f32, VMEM-resident

    # --- fused QKV projection (bf16 MXU operands, f32 accumulate).
    #     1/sqrt(d) is already folded into the Q weights/bias at init.
    qkv = jnp.dot(x.astype(jnp.bfloat16), wqkv_ref[...],
                  preferred_element_type=jnp.float32) + bqkv_ref[...]   # [S, 3H]

    # --- split heads with layout-friendly ops only:
    #     2-D transpose -> [3H, S], major-dim reshape -> [nH, d, S],
    #     last-two-dims swap for Q -> [nH, S, d].
    qkvT = qkv.T                                       # [3H, S]
    qT = qkvT[:H].reshape(nH, d, S)                    # [nH, d, S]
    kT = qkvT[H:2 * H].reshape(nH, d, S)               # [nH, d, S]
    vT = qkvT[2 * H:].reshape(nH, d, S)                # [nH, d, S]
    q = jnp.swapaxes(qT, 1, 2)                         # [nH, S, d]

    # additive attention bias from the key mask
    bias = (1.0 - mask_ref[...]) * (-1e9)              # [1, S]

    # --- all heads in one batched contraction each (no per-head loop / concat)
    s = jnp.einsum("hqd,hdk->hqk",
                   q.astype(jnp.bfloat16), kT.astype(jnp.bfloat16),
                   preferred_element_type=jnp.float32) + bias[None]     # [nH,S,S]
    s = s - jnp.max(s, axis=-1, keepdims=True)
    p = jnp.exp(s)
    p = p * pl.reciprocal(jnp.sum(p, axis=-1, keepdims=True), approx=True)
    # context transposed per head ([nH, d, S]) via the contract-last pattern
    ctxT = jnp.einsum("hds,hqs->hdq",
                      vT.astype(jnp.bfloat16), p.astype(jnp.bfloat16),
                      preferred_element_type=jnp.float32)
    ctx = ctxT.reshape(H, S).T                         # [S, H]  (head-major merge)

    # --- attention output projection + residual + LayerNorm
    attn = jnp.dot(ctx.astype(jnp.bfloat16), wo_ref[...],
                   preferred_element_type=jnp.float32) + bo_ref[...]
    h1 = _layernorm(attn + x, ln1g_ref[...], ln1b_ref[...])

    # --- FFN (tanh-approx GELU -> EUP) + residual + LayerNorm
    inter = jax.nn.gelu(
        jnp.dot(h1.astype(jnp.bfloat16), wi_ref[...],
                preferred_element_type=jnp.float32) + bi_ref[...],
        approximate=True)
    ffn = jnp.dot(inter.astype(jnp.bfloat16), wo2_ref[...],
                  preferred_element_type=jnp.float32) + bo2_ref[...]
    h2 = _layernorm(ffn + h1, ln2g_ref[...], ln2b_ref[...])

    h_ref[...] = h2
    tok0_ref[pl.ds(l + 1, 1), :] = h2[0:1, :]

    # --- last layer: pool the token-0 rows of ALL L+1 hidden states at once
    @pl.when(l == L - 1)
    def _():
        pooled = jnp.tanh(
            jnp.dot(tok0_ref[...].astype(jnp.bfloat16), pw_ref[...],
                    preferred_element_type=jnp.float32) + pb_ref[...])
        out_ref[...] = pooled.astype(out_ref.dtype)


# ------------------------- parameters (synthetic) ---------------------------

def init_params(key, cfg):
    H, I, L = cfg["hidden"], cfg["intermediate"], cfg["layers"]
    nH = cfg["heads"]
    d = H // nH
    scale = 1.0 / math.sqrt(d)
    keys = iter(jax.random.split(key, 4 + 6 * L))

    def nrm(shape):
        return 0.02 * jax.random.normal(next(keys), shape, jnp.float32)

    def ones(n):
        return jnp.ones((1, n), jnp.float32)

    def zeros(n):
        return jnp.zeros((1, n), jnp.float32)

    p = {
        "word_emb": nrm((cfg["vocab_size"], H)),
        "pos_emb": nrm((cfg["max_pos"], H)),
        "type_emb": nrm((1, H)),
        "emb_ln_g": ones(H), "emb_ln_b": zeros(H),
        "pooler_w": nrm((H, H)).astype(jnp.bfloat16),
        "pooler_b": zeros(H),
    }

    wqkv, bqkv, wo, bo, ln1g, ln1b = [], [], [], [], [], []
    wi, bi, wo2, bo2, ln2g, ln2b = [], [], [], [], [], []
    for _ in range(L):
        wq, wk, wv = nrm((H, H)), nrm((H, H)), nrm((H, H))
        bq = bk = bv = jnp.zeros((1, H), jnp.float32)
        # fold the 1/sqrt(d) attention scale into the Q projection (weights+bias)
        wqkv.append(jnp.concatenate([wq * scale, wk, wv], axis=1))
        bqkv.append(jnp.concatenate([bq * scale, bk, bv], axis=1))
        wo.append(nrm((H, H))); bo.append(zeros(H))
        ln1g.append(ones(H)); ln1b.append(zeros(H))
        wi.append(nrm((H, I))); bi.append(zeros(I))
        wo2.append(nrm((I, H))); bo2.append(zeros(H))
        ln2g.append(ones(H)); ln2b.append(zeros(H))

    # stacked [L, ...] per-layer weights; matmul operands stored bf16 (MXU-native)
    p.update(
        wqkv=jnp.stack(wqkv).astype(jnp.bfloat16),    # [L, H, 3H]
        bqkv=jnp.stack(bqkv),                         # [L, 1, 3H] f32
        wo=jnp.stack(wo).astype(jnp.bfloat16),        # [L, H, H]
        bo=jnp.stack(bo),                             # [L, 1, H]
        ln1_g=jnp.stack(ln1g), ln1_b=jnp.stack(ln1b),
        wi=jnp.stack(wi).astype(jnp.bfloat16),        # [L, H, I]
        bi=jnp.stack(bi),                             # [L, 1, I]
        wo2=jnp.stack(wo2).astype(jnp.bfloat16),      # [L, I, H]
        bo2=jnp.stack(bo2),                           # [L, 1, H]
        ln2_g=jnp.stack(ln2g), ln2_b=jnp.stack(ln2b),
    )
    return p


# ------------------------------ forward pass --------------------------------

def early_roberta_forward(params, input_ids, mask=None, cfg=CFG):
    B, S = input_ids.shape
    H, nH, L, I = cfg["hidden"], cfg["heads"], cfg["layers"], cfg["intermediate"]
    d = H // nH
    pad_id = cfg["pad_id"]

    if mask is None:
        mask = jnp.ones((B, S), jnp.float32)
    mask3 = mask.astype(jnp.float32)[:, None, :]                 # [B, 1, S]

    # --- embeddings (gathers are JAX glue; everything else is the Pallas kernel)
    not_pad = (input_ids != pad_id).astype(jnp.int32)
    pos_ids = jnp.cumsum(not_pad, axis=1) * not_pad + pad_id     # RoBERTa positions
    emb = (jnp.take(params["word_emb"], input_ids, axis=0)
           + jnp.take(params["pos_emb"], pos_ids, axis=0)
           + params["type_emb"][0]).astype(jnp.float32)          # [B, S, H]

    kernel = functools.partial(_fused_encoder_kernel, S=S, nH=nH, d=d, L=L)

    layer_spec = lambda x, y: pl.BlockSpec((None, x, y), lambda b, l: (l, 0, 0))
    const_spec = lambda x, y: pl.BlockSpec((x, y), lambda b, l: (0, 0))

    out = pl.pallas_call(
        kernel,
        out_shape=jax.ShapeDtypeStruct((B, L + 1, H), jnp.float32),
        grid_spec=pltpu.PrefetchScalarGridSpec(
            num_scalar_prefetch=0,
            grid=(B, L),
            in_specs=[
                pl.BlockSpec((None, S, H), lambda b, l: (b, 0, 0)),   # emb
                pl.BlockSpec((None, 1, S), lambda b, l: (b, 0, 0)),   # mask
                const_spec(1, H), const_spec(1, H),                   # emb LN g/b
                layer_spec(H, 3 * H), layer_spec(1, 3 * H),           # wqkv, bqkv
                layer_spec(H, H), layer_spec(1, H),                   # wo, bo
                layer_spec(1, H), layer_spec(1, H),                   # ln1 g/b
                layer_spec(H, I), layer_spec(1, I),                   # wi, bi
                layer_spec(I, H), layer_spec(1, H),                   # wo2, bo2
                layer_spec(1, H), layer_spec(1, H),                   # ln2 g/b
                const_spec(H, H), const_spec(1, H),                   # pooler w/b
            ],
            out_specs=pl.BlockSpec((None, L + 1, H), lambda b, l: (b, 0, 0)),
            scratch_shapes=[pltpu.VMEM((S, H), jnp.float32),          # hidden slab
                            pltpu.VMEM((L + 1, H), jnp.float32)],     # token-0 rows
        ),
        compiler_params=pltpu.CompilerParams(
            dimension_semantics=("parallel", "arbitrary")),
    )(emb, mask3,
      params["emb_ln_g"], params["emb_ln_b"],
      params["wqkv"], params["bqkv"], params["wo"], params["bo"],
      params["ln1_g"], params["ln1_b"],
      params["wi"], params["bi"], params["wo2"], params["bo2"],
      params["ln2_g"], params["ln2_b"],
      params["pooler_w"], params["pooler_b"])

    return [out[:, i, :] for i in range(L + 1)]
    # TODO(synk): dropout layers are identity in eval mode and are omitted.


# ---------------------------------- main -------------------------------------

if __name__ == "__main__":
    key = jax.random.PRNGKey(0)
    pkey, ikey = jax.random.split(key)
    params = init_params(pkey, CFG)

    B, S = 2, 8
    input_ids = jax.random.randint(ikey, (B, S), 2, CFG["vocab_size"],
                                   dtype=jnp.int32)
    mask = jnp.ones((B, S), jnp.float32).at[1, 6:].set(0.0)  # pad last 2 of seq 1

    pooled = early_roberta_forward(params, input_ids, mask)
    pooled = [jax.block_until_ready(p) for p in pooled]

    assert len(pooled) == CFG["layers"] + 1          # embeddings + each layer
    assert all(p.shape == (B, CFG["hidden"]) for p in pooled)
    assert all(bool(jnp.all(jnp.isfinite(p))) for p in pooled)
    print("KERNEL_OK")
</pallas_src>

<mosaic_0001>
module attributes {stable_mosaic.version = 11 : i64} {
  func.func @_fused_encoder_kernel(%arg0: i32, %arg1: i32, %arg2: memref<1x8x32xf32, #tpu.memory_space<vmem>>, %arg3: memref<1x1x8xf32, #tpu.memory_space<vmem>>, %arg4: memref<1x32xf32, #tpu.memory_space<vmem>>, %arg5: memref<1x32xf32, #tpu.memory_space<vmem>>, %arg6: memref<1x32x96xbf16, #tpu.memory_space<vmem>>, %arg7: memref<1x1x96xf32, #tpu.memory_space<vmem>>, %arg8: memref<1x32x32xbf16, #tpu.memory_space<vmem>>, %arg9: memref<1x1x32xf32, #tpu.memory_space<vmem>>, %arg10: memref<1x1x32xf32, #tpu.memory_space<vmem>>, %arg11: memref<1x1x32xf32, #tpu.memory_space<vmem>>, %arg12: memref<1x32x64xbf16, #tpu.memory_space<vmem>>, %arg13: memref<1x1x64xf32, #tpu.memory_space<vmem>>, %arg14: memref<1x64x32xbf16, #tpu.memory_space<vmem>>, %arg15: memref<1x1x32xf32, #tpu.memory_space<vmem>>, %arg16: memref<1x1x32xf32, #tpu.memory_space<vmem>>, %arg17: memref<1x1x32xf32, #tpu.memory_space<vmem>>, %arg18: memref<32x32xbf16, #tpu.memory_space<vmem>>, %arg19: memref<1x32xf32, #tpu.memory_space<vmem>>, %arg20: memref<1x3x32xf32, #tpu.memory_space<vmem>>, %arg21: memref<8x32xf32, #tpu.memory_space<vmem>>, %arg22: memref<3x32xf32, #tpu.memory_space<vmem>>) attributes {dimension_semantics = [#tpu.dimension_semantics<parallel>, #tpu.dimension_semantics<arbitrary>], iteration_bounds = array<i64: 2, 2>, scalar_prefetch = 0 : i64, scratch_operands = 2 : i64, tpu.core_type = #tpu.core_type<tc>, window_params = [{transform_indices = @transform_0, window_bounds = array<i64: 1, 8, 32>}, {transform_indices = @transform_1, window_bounds = array<i64: 1, 1, 8>}, {pipeline_mode = #tpu.pipeline_mode<synchronous>, transform_indices = @transform_2, window_bounds = array<i64: 1, 32>}, {pipeline_mode = #tpu.pipeline_mode<synchronous>, transform_indices = @transform_3, window_bounds = array<i64: 1, 32>}, {transform_indices = @transform_4, window_bounds = array<i64: 1, 32, 96>}, {transform_indices = @transform_5, window_bounds = array<i64: 1, 1, 96>}, {transform_indices = @transform_6, window_bounds = array<i64: 1, 32, 32>}, {transform_indices = @transform_7, window_bounds = array<i64: 1, 1, 32>}, {transform_indices = @transform_8, window_bounds = array<i64: 1, 1, 32>}, {transform_indices = @transform_9, window_bounds = array<i64: 1, 1, 32>}, {transform_indices = @transform_10, window_bounds = array<i64: 1, 32, 64>}, {transform_indices = @transform_11, window_bounds = array<i64: 1, 1, 64>}, {transform_indices = @transform_12, window_bounds = array<i64: 1, 64, 32>}, {transform_indices = @transform_13, window_bounds = array<i64: 1, 1, 32>}, {transform_indices = @transform_14, window_bounds = array<i64: 1, 1, 32>}, {transform_indices = @transform_15, window_bounds = array<i64: 1, 1, 32>}, {pipeline_mode = #tpu.pipeline_mode<synchronous>, transform_indices = @transform_16, window_bounds = array<i64: 32, 32>}, {pipeline_mode = #tpu.pipeline_mode<synchronous>, transform_indices = @transform_17, window_bounds = array<i64: 1, 32>}, {transform_indices = @transform_18, window_bounds = array<i64: 1, 3, 32>}]} {
    %c0_i32 = arith.constant 0 : i32
    %0 = arith.cmpi eq, %arg1, %c0_i32 : i32
    %1 = arith.extui %0 : i1 to i32
    %c0_i32_0 = arith.constant 0 : i32
    %2 = arith.cmpi ne, %1, %c0_i32_0 : i32
    scf.if %2 {
      %c0_69 = arith.constant 0 : index
      %c0_70 = arith.constant 0 : index
      %c0_71 = arith.constant 0 : index
      %146 = vector.load %arg2[%c0_69, %c0_70, %c0_71] : memref<1x8x32xf32, #tpu.memory_space<vmem>>, vector<1x8x32xf32>
      %147 = vector.shape_cast %146 : vector<1x8x32xf32> to vector<8x32xf32>
      %c0_72 = arith.constant 0 : index
      %c0_73 = arith.constant 0 : index
      %148 = vector.load %arg4[%c0_72, %c0_73] : memref<1x32xf32, #tpu.memory_space<vmem>>, vector<1x32xf32>
      %c0_74 = arith.constant 0 : index
      %c0_75 = arith.constant 0 : index
      %149 = vector.load %arg5[%c0_74, %c0_75] : memref<1x32xf32, #tpu.memory_space<vmem>>, vector<1x32xf32>
      %cst_76 = arith.constant dense<0.000000e+00> : vector<8xf32>
      %150 = vector.multi_reduction <add>, %147, %cst_76 [1] : vector<8x32xf32> to vector<8xf32>
      %151 = vector.shape_cast %150 : vector<8xf32> to vector<8x1xf32>
      %cst_77 = arith.constant 3.200000e+01 : f32
      %152 = vector.broadcast %cst_77 : f32 to vector<8x1xf32>
      %153 = arith.divf %151, %152 : vector<8x1xf32>
      %154 = vector.broadcast %153 : vector<8x1xf32> to vector<8x32xf32>
      %155 = arith.subf %147, %154 : vector<8x32xf32>
      %156 = arith.mulf %155, %155 : vector<8x32xf32>
      %cst_78 = arith.constant dense<0.000000e+00> : vector<8xf32>
      %157 = vector.multi_reduction <add>, %156, %cst_78 [1] : vector<8x32xf32> to vector<8xf32>
      %158 = vector.shape_cast %157 : vector<8xf32> to vector<8x1xf32>
      %cst_79 = arith.constant 3.200000e+01 : f32
      %159 = vector.broadcast %cst_79 : f32 to vector<8x1xf32>
      %160 = arith.divf %158, %159 : vector<8x1xf32>
      %161 = vector.broadcast %153 : vector<8x1xf32> to vector<8x32xf32>
      %162 = arith.subf %147, %161 : vector<8x32xf32>
      %cst_80 = arith.constant 9.99999974E-6 : f32
      %163 = vector.broadcast %cst_80 : f32 to vector<8x1xf32>
      %164 = arith.addf %160, %163 : vector<8x1xf32>
      %165 = math.rsqrt %164 : vector<8x1xf32>
      %166 = vector.broadcast %165 : vector<8x1xf32> to vector<8x32xf32>
      %167 = arith.mulf %162, %166 : vector<8x32xf32>
      %168 = vector.broadcast %148 : vector<1x32xf32> to vector<8x32xf32>
      %169 = arith.mulf %167, %168 : vector<8x32xf32>
      %170 = vector.broadcast %149 : vector<1x32xf32> to vector<8x32xf32>
      %171 = arith.addf %169, %170 : vector<8x32xf32>
      %c0_81 = arith.constant 0 : index
      %c0_82 = arith.constant 0 : index
      %172 = vector.load %arg21[%c0_81, %c0_82] : memref<8x32xf32, #tpu.memory_space<vmem>>, vector<8x32xf32>
      tpu.vector_store %arg21[%c0_81, %c0_82], %171 {strides = array<i32>} : memref<8x32xf32, #tpu.memory_space<vmem>>, vector<8x32xf32>,
      %173 = vector.extract_strided_slice %171 {offsets = [0, 0], sizes = [1, 32], strides = [1, 1]} : vector<8x32xf32> to vector<1x32xf32>
      %c0_83 = arith.constant 0 : index
      %c0_84 = arith.constant 0 : index
      %174 = vector.load %arg22[%c0_83, %c0_84] : memref<3x32xf32, #tpu.memory_space<vmem>>, vector<1x32xf32>
      tpu.vector_store %arg22[%c0_83, %c0_84], %173 {strides = array<i32>} : memref<3x32xf32, #tpu.memory_space<vmem>>, vector<1x32xf32>,
    } else {
    }
    %c0 = arith.constant 0 : index
    %c0_1 = arith.constant 0 : index
    %3 = vector.load %arg21[%c0, %c0_1] : memref<8x32xf32, #tpu.memory_space<vmem>>, vector<8x32xf32>
    %4 = arith.truncf %3 : vector<8x32xf32> to vector<8x32xbf16>
    %c0_2 = arith.constant 0 : index
    %c0_3 = arith.constant 0 : index
    %c0_4 = arith.constant 0 : index
    %5 = vector.load %arg6[%c0_2, %c0_3, %c0_4] : memref<1x32x96xbf16, #tpu.memory_space<vmem>>, vector<1x32x96xbf16>
    %6 = vector.shape_cast %5 : vector<1x32x96xbf16> to vector<32x96xbf16>
    %cst = arith.constant dense<0.000000e+00> : vector<8x96xf32>
    %7 = tpu.matmul %4, %6, %cst {dimension_numbers = #tpu.dot_dimension_numbers<[1], [0], [0], [1], [0, 0, 1, 1], [], []>} : vector<8x32xbf16>, vector<32x96xbf16>, vector<8x96xf32> -> vector<8x96xf32>
    %c0_5 = arith.constant 0 : index
    %c0_6 = arith.constant 0 : index
    %c0_7 = arith.constant 0 : index
    %8 = vector.load %arg7[%c0_5, %c0_6, %c0_7] : memref<1x1x96xf32, #tpu.memory_space<vmem>>, vector<1x1x96xf32>
    %9 = vector.shape_cast %8 : vector<1x1x96xf32> to vector<1x96xf32>
    %10 = vector.broadcast %9 : vector<1x96xf32> to vector<8x96xf32>
    %11 = arith.addf %7, %10 : vector<8x96xf32>
    %12 = tpu.transpose %11, [1, 0] : vector<8x96xf32> -> vector<96x8xf32>
    %13 = vector.extract_strided_slice %12 {offsets = [0, 0], sizes = [32, 8], strides = [1, 1]} : vector<96x8xf32> to vector<32x8xf32>
    %14 = vector.shape_cast %13 : vector<32x8xf32> to vector<4x8x8xf32>
    %15 = vector.extract_strided_slice %12 {offsets = [32, 0], sizes = [32, 8], strides = [1, 1]} : vector<96x8xf32> to vector<32x8xf32>
    %16 = vector.shape_cast %15 : vector<32x8xf32> to vector<4x8x8xf32>
    %17 = vector.extract_strided_slice %12 {offsets = [64, 0], sizes = [32, 8], strides = [1, 1]} : vector<96x8xf32> to vector<32x8xf32>
    %18 = vector.shape_cast %17 : vector<32x8xf32> to vector<4x8x8xf32>
    %19 = tpu.transpose %14, [0, 2, 1] : vector<4x8x8xf32> -> vector<4x8x8xf32>
    %c0_8 = arith.constant 0 : index
    %c0_9 = arith.constant 0 : index
    %c0_10 = arith.constant 0 : index
    %20 = vector.load %arg3[%c0_8, %c0_9, %c0_10] : memref<1x1x8xf32, #tpu.memory_space<vmem>>, vector<1x1x8xf32>
    %21 = vector.shape_cast %20 : vector<1x1x8xf32> to vector<1x8xf32>
    %cst_11 = arith.constant 1.000000e+00 : f32
    %22 = vector.broadcast %cst_11 : f32 to vector<1x8xf32>
    %23 = arith.subf %22, %21 : vector<1x8xf32>
    %cst_12 = arith.constant -1.000000e+09 : f32
    %24 = vector.broadcast %cst_12 : f32 to vector<1x8xf32>
    %25 = arith.mulf %23, %24 : vector<1x8xf32>
    %26 = arith.truncf %19 : vector<4x8x8xf32> to vector<4x8x8xbf16>
    %27 = arith.truncf %16 : vector<4x8x8xf32> to vector<4x8x8xbf16>
    "tpu.trace_start"() <{level = 10 : i32, message = "hqd,hdk->hqk"}> : () -> ()
    %cst_13 = arith.constant dense<0.000000e+00> : vector<4x8x8xf32>
    %28 = tpu.matmul %26, %27, %cst_13 {dimension_numbers = #tpu.dot_dimension_numbers<[2], [1], [1], [2], [0, 0, 0, 1, 1, 2], [0], [0]>} : vector<4x8x8xbf16>, vector<4x8x8xbf16>, vector<4x8x8xf32> -> vector<4x8x8xf32>
    "tpu.trace_stop"() : () -> ()
    %29 = vector.shape_cast %25 : vector<1x8xf32> to vector<1x1x8xf32>
    %30 = vector.broadcast %29 : vector<1x1x8xf32> to vector<4x8x8xf32>
    %31 = arith.addf %28, %30 : vector<4x8x8xf32>
    %cst_14 = arith.constant dense<0xFF800000> : vector<4x8xf32>
    %32 = vector.multi_reduction <maximumf>, %31, %cst_14 [2] : vector<4x8x8xf32> to vector<4x8xf32>
    %33 = vector.shape_cast %32 : vector<4x8xf32> to vector<4x8x1xf32>
    %34 = vector.broadcast %33 : vector<4x8x1xf32> to vector<4x8x8xf32>
    %35 = arith.subf %31, %34 : vector<4x8x8xf32>
    %36 = math.exp %35 : vector<4x8x8xf32>
    %cst_15 = arith.constant dense<0.000000e+00> : vector<4x8xf32>
    %37 = vector.multi_reduction <add>, %36, %cst_15 [2] : vector<4x8x8xf32> to vector<4x8xf32>
    %38 = vector.shape_cast %37 : vector<4x8xf32> to vector<4x8x1xf32>
    %39 = tpu.reciprocal %38 {approx = true} : vector<4x8x1xf32> -> vector<4x8x1xf32>
    %40 = vector.broadcast %39 : vector<4x8x1xf32> to vector<4x8x8xf32>
    %41 = arith.mulf %36, %40 : vector<4x8x8xf32>
    %42 = arith.truncf %18 : vector<4x8x8xf32> to vector<4x8x8xbf16>
    %43 = arith.truncf %41 : vector<4x8x8xf32> to vector<4x8x8xbf16>
    "tpu.trace_start"() <{level = 10 : i32, message = "hds,hqs->hdq"}> : () -> ()
    %cst_16 = arith.constant dense<0.000000e+00> : vector<4x8x8xf32>
    %44 = tpu.matmul %42, %43, %cst_16 {dimension_numbers = #tpu.dot_dimension_numbers<[2], [2], [1], [1], [0, 0, 0, 1, 1, 1], [0], [0]>} : vector<4x8x8xbf16>, vector<4x8x8xbf16>, vector<4x8x8xf32> -> vector<4x8x8xf32>
    "tpu.trace_stop"() : () -> ()
    %45 = vector.shape_cast %44 : vector<4x8x8xf32> to vector<32x8xf32>
    %46 = tpu.transpose %45, [1, 0] : vector<32x8xf32> -> vector<8x32xf32>
    %47 = arith.truncf %46 : vector<8x32xf32> to vector<8x32xbf16>
    %c0_17 = arith.constant 0 : index
    %c0_18 = arith.constant 0 : index
    %c0_19 = arith.constant 0 : index
    %48 = vector.load %arg8[%c0_17, %c0_18, %c0_19] : memref<1x32x32xbf16, #tpu.memory_space<vmem>>, vector<1x32x32xbf16>
    %49 = vector.shape_cast %48 : vector<1x32x32xbf16> to vector<32x32xbf16>
    %cst_20 = arith.constant dense<0.000000e+00> : vector<8x32xf32>
    %50 = tpu.matmul %47, %49, %cst_20 {dimension_numbers = #tpu.dot_dimension_numbers<[1], [0], [0], [1], [0, 0, 1, 1], [], []>} : vector<8x32xbf16>, vector<32x32xbf16>, vector<8x32xf32> -> vector<8x32xf32>
    %c0_21 = arith.constant 0 : index
    %c0_22 = arith.constant 0 : index
    %c0_23 = arith.constant 0 : index
    %51 = vector.load %arg9[%c0_21, %c0_22, %c0_23] : memref<1x1x32xf32, #tpu.memory_space<vmem>>, vector<1x1x32xf32>
    %52 = vector.shape_cast %51 : vector<1x1x32xf32> to vector<1x32xf32>
    %53 = vector.broadcast %52 : vector<1x32xf32> to vector<8x32xf32>
    %54 = arith.addf %50, %53 : vector<8x32xf32>
    %55 = arith.addf %54, %3 : vector<8x32xf32>
    %c0_24 = arith.constant 0 : index
    %c0_25 = arith.constant 0 : index
    %c0_26 = arith.constant 0 : index
    %56 = vector.load %arg10[%c0_24, %c0_25, %c0_26] : memref<1x1x32xf32, #tpu.memory_space<vmem>>, vector<1x1x32xf32>
    %57 = vector.shape_cast %56 : vector<1x1x32xf32> to vector<1x32xf32>
    %c0_27 = arith.constant 0 : index
    %c0_28 = arith.constant 0 : index
    %c0_29 = arith.constant 0 : index
    %58 = vector.load %arg11[%c0_27, %c0_28, %c0_29] : memref<1x1x32xf32, #tpu.memory_space<vmem>>, vector<1x1x32xf32>
    %59 = vector.shape_cast %58 : vector<1x1x32xf32> to vector<1x32xf32>
    %cst_30 = arith.constant dense<0.000000e+00> : vector<8xf32>
    %60 = vector.multi_reduction <add>, %55, %cst_30 [1] : vector<8x32xf32> to vector<8xf32>
    %61 = vector.shape_cast %60 : vector<8xf32> to vector<8x1xf32>
    %cst_31 = arith.constant 3.200000e+01 : f32
    %62 = vector.broadcast %cst_31 : f32 to vector<8x1xf32>
    %63 = arith.divf %61, %62 : vector<8x1xf32>
    %64 = vector.broadcast %63 : vector<8x1xf32> to vector<8x32xf32>
    %65 = arith.subf %55, %64 : vector<8x32xf32>
    %66 = arith.mulf %65, %65 : vector<8x32xf32>
    %cst_32 = arith.constant dense<0.000000e+00> : vector<8xf32>
    %67 = vector.multi_reduction <add>, %66, %cst_32 [1] : vector<8x32xf32> to vector<8xf32>
    %68 = vector.shape_cast %67 : vector<8xf32> to vector<8x1xf32>
    %cst_33 = arith.constant 3.200000e+01 : f32
    %69 = vector.broadcast %cst_33 : f32 to vector<8x1xf32>
    %70 = arith.divf %68, %69 : vector<8x1xf32>
    %71 = vector.broadcast %63 : vector<8x1xf32> to vector<8x32xf32>
    %72 = arith.subf %55, %71 : vector<8x32xf32>
    %cst_34 = arith.constant 9.99999974E-6 : f32
    %73 = vector.broadcast %cst_34 : f32 to vector<8x1xf32>
    %74 = arith.addf %70, %73 : vector<8x1xf32>
    %75 = math.rsqrt %74 : vector<8x1xf32>
    %76 = vector.broadcast %75 : vector<8x1xf32> to vector<8x32xf32>
    %77 = arith.mulf %72, %76 : vector<8x32xf32>
    %78 = vector.broadcast %57 : vector<1x32xf32> to vector<8x32xf32>
    %79 = arith.mulf %77, %78 : vector<8x32xf32>
    %80 = vector.broadcast %59 : vector<1x32xf32> to vector<8x32xf32>
    %81 = arith.addf %79, %80 : vector<8x32xf32>
    %82 = arith.truncf %81 : vector<8x32xf32> to vector<8x32xbf16>
    %c0_35 = arith.constant 0 : index
    %c0_36 = arith.constant 0 : index
    %c0_37 = arith.constant 0 : index
    %83 = vector.load %arg12[%c0_35, %c0_36, %c0_37] : memref<1x32x64xbf16, #tpu.memory_space<vmem>>, vector<1x32x64xbf16>
    %84 = vector.shape_cast %83 : vector<1x32x64xbf16> to vector<32x64xbf16>
    %cst_38 = arith.constant dense<0.000000e+00> : vector<8x64xf32>
    %85 = tpu.matmul %82, %84, %cst_38 {dimension_numbers = #tpu.dot_dimension_numbers<[1], [0], [0], [1], [0, 0, 1, 1], [], []>} : vector<8x32xbf16>, vector<32x64xbf16>, vector<8x64xf32> -> vector<8x64xf32>
    %c0_39 = arith.constant 0 : index
    %c0_40 = arith.constant 0 : index
    %c0_41 = arith.constant 0 : index
    %86 = vector.load %arg13[%c0_39, %c0_40, %c0_41] : memref<1x1x64xf32, #tpu.memory_space<vmem>>, vector<1x1x64xf32>
    %87 = vector.shape_cast %86 : vector<1x1x64xf32> to vector<1x64xf32>
    %88 = vector.broadcast %87 : vector<1x64xf32> to vector<8x64xf32>
    %89 = arith.addf %85, %88 : vector<8x64xf32>
    %90 = arith.mulf %89, %89 : vector<8x64xf32>
    %91 = arith.mulf %89, %90 : vector<8x64xf32>
    %cst_42 = arith.constant 4.471500e-02 : f32
    %92 = vector.broadcast %cst_42 : f32 to vector<8x64xf32>
    %93 = arith.mulf %92, %91 : vector<8x64xf32>
    %94 = arith.addf %89, %93 : vector<8x64xf32>
    %cst_43 = arith.constant 0.797884583 : f32
    %95 = vector.broadcast %cst_43 : f32 to vector<8x64xf32>
    %96 = arith.mulf %95, %94 : vector<8x64xf32>
    %97 = math.tanh %96 : vector<8x64xf32>
    %cst_44 = arith.constant 1.000000e+00 : f32
    %98 = vector.broadcast %cst_44 : f32 to vector<8x64xf32>
    %99 = arith.addf %98, %97 : vector<8x64xf32>
    %cst_45 = arith.constant 5.000000e-01 : f32
    %100 = vector.broadcast %cst_45 : f32 to vector<8x64xf32>
    %101 = arith.mulf %100, %99 : vector<8x64xf32>
    %102 = arith.mulf %89, %101 : vector<8x64xf32>
    %103 = arith.truncf %102 : vector<8x64xf32> to vector<8x64xbf16>
    %c0_46 = arith.constant 0 : index
    %c0_47 = arith.constant 0 : index
    %c0_48 = arith.constant 0 : index
    %104 = vector.load %arg14[%c0_46, %c0_47, %c0_48] : memref<1x64x32xbf16, #tpu.memory_space<vmem>>, vector<1x64x32xbf16>
    %105 = vector.shape_cast %104 : vector<1x64x32xbf16> to vector<64x32xbf16>
    %cst_49 = arith.constant dense<0.000000e+00> : vector<8x32xf32>
    %106 = tpu.matmul %103, %105, %cst_49 {dimension_numbers = #tpu.dot_dimension_numbers<[1], [0], [0], [1], [0, 0, 1, 1], [], []>} : vector<8x64xbf16>, vector<64x32xbf16>, vector<8x32xf32> -> vector<8x32xf32>
    %c0_50 = arith.constant 0 : index
    %c0_51 = arith.constant 0 : index
    %c0_52 = arith.constant 0 : index
    %107 = vector.load %arg15[%c0_50, %c0_51, %c0_52] : memref<1x1x32xf32, #tpu.memory_space<vmem>>, vector<1x1x32xf32>
    %108 = vector.shape_cast %107 : vector<1x1x32xf32> to vector<1x32xf32>
    %109 = vector.broadcast %108 : vector<1x32xf32> to vector<8x32xf32>
    %110 = arith.addf %106, %109 : vector<8x32xf32>
    %111 = arith.addf %110, %81 : vector<8x32xf32>
    %c0_53 = arith.constant 0 : index
    %c0_54 = arith.constant 0 : index
    %c0_55 = arith.constant 0 : index
    %112 = vector.load %arg16[%c0_53, %c0_54, %c0_55] : memref<1x1x32xf32, #tpu.memory_space<vmem>>, vector<1x1x32xf32>
    %113 = vector.shape_cast %112 : vector<1x1x32xf32> to vector<1x32xf32>
    %c0_56 = arith.constant 0 : index
    %c0_57 = arith.constant 0 : index
    %c0_58 = arith.constant 0 : index
    %114 = vector.load %arg17[%c0_56, %c0_57, %c0_58] : memref<1x1x32xf32, #tpu.memory_space<vmem>>, vector<1x1x32xf32>
    %115 = vector.shape_cast %114 : vector<1x1x32xf32> to vector<1x32xf32>
    %cst_59 = arith.constant dense<0.000000e+00> : vector<8xf32>
    %116 = vector.multi_reduction <add>, %111, %cst_59 [1] : vector<8x32xf32> to vector<8xf32>
    %117 = vector.shape_cast %116 : vector<8xf32> to vector<8x1xf32>
    %cst_60 = arith.constant 3.200000e+01 : f32
    %118 = vector.broadcast %cst_60 : f32 to vector<8x1xf32>
    %119 = arith.divf %117, %118 : vector<8x1xf32>
    %120 = vector.broadcast %119 : vector<8x1xf32> to vector<8x32xf32>
    %121 = arith.subf %111, %120 : vector<8x32xf32>
    %122 = arith.mulf %121, %121 : vector<8x32xf32>
    %cst_61 = arith.constant dense<0.000000e+00> : vector<8xf32>
    %123 = vector.multi_reduction <add>, %122, %cst_61 [1] : vector<8x32xf32> to vector<8xf32>
    %124 = vector.shape_cast %123 : vector<8xf32> to vector<8x1xf32>
    %cst_62 = arith.constant 3.200000e+01 : f32
    %125 = vector.broadcast %cst_62 : f32 to vector<8x1xf32>
    %126 = arith.divf %124, %125 : vector<8x1xf32>
    %127 = vector.broadcast %119 : vector<8x1xf32> to vector<8x32xf32>
    %128 = arith.subf %111, %127 : vector<8x32xf32>
    %cst_63 = arith.constant 9.99999974E-6 : f32
    %129 = vector.broadcast %cst_63 : f32 to vector<8x1xf32>
    %130 = arith.addf %126, %129 : vector<8x1xf32>
    %131 = math.rsqrt %130 : vector<8x1xf32>
    %132 = vector.broadcast %131 : vector<8x1xf32> to vector<8x32xf32>
    %133 = arith.mulf %128, %132 : vector<8x32xf32>
    %134 = vector.broadcast %113 : vector<1x32xf32> to vector<8x32xf32>
    %135 = arith.mulf %133, %134 : vector<8x32xf32>
    %136 = vector.broadcast %115 : vector<1x32xf32> to vector<8x32xf32>
    %137 = arith.addf %135, %136 : vector<8x32xf32>
    %c0_64 = arith.constant 0 : index
    %c0_65 = arith.constant 0 : index
    %138 = vector.load %arg21[%c0_64, %c0_65] : memref<8x32xf32, #tpu.memory_space<vmem>>, vector<8x32xf32>
    tpu.vector_store %arg21[%c0_64, %c0_65], %137 {strides = array<i32>} : memref<8x32xf32, #tpu.memory_space<vmem>>, vector<8x32xf32>,
    %139 = vector.extract_strided_slice %137 {offsets = [0, 0], sizes = [1, 32], strides = [1, 1]} : vector<8x32xf32> to vector<1x32xf32>
    %c1_i32 = arith.constant 1 : i32
    %140 = arith.addi %arg1, %c1_i32 : i32
    %141 = arith.index_cast %140 : i32 to index
    %c0_66 = arith.constant 0 : index
    %142 = vector.load %arg22[%141, %c0_66] : memref<3x32xf32, #tpu.memory_space<vmem>>, vector<1x32xf32>
    tpu.vector_store %arg22[%141, %c0_66], %139 {strides = array<i32>} : memref<3x32xf32, #tpu.memory_space<vmem>>, vector<1x32xf32>,
    %c1_i32_67 = arith.constant 1 : i32
    %143 = arith.cmpi eq, %arg1, %c1_i32_67 : i32
    %144 = arith.extui %143 : i1 to i32
    %c0_i32_68 = arith.constant 0 : i32
    %145 = arith.cmpi ne, %144, %c0_i32_68 : i32
    scf.if %145 {
      %c0_69 = arith.constant 0 : index
      %c0_70 = arith.constant 0 : index
      %146 = vector.load %arg22[%c0_69, %c0_70] : memref<3x32xf32, #tpu.memory_space<vmem>>, vector<3x32xf32>
      %147 = arith.truncf %146 : vector<3x32xf32> to vector<3x32xbf16>
      %c0_71 = arith.constant 0 : index
      %c0_72 = arith.constant 0 : index
      %148 = vector.load %arg18[%c0_71, %c0_72] : memref<32x32xbf16, #tpu.memory_space<vmem>>, vector<32x32xbf16>
      %cst_73 = arith.constant dense<0.000000e+00> : vector<3x32xf32>
      %149 = tpu.matmul %147, %148, %cst_73 {dimension_numbers = #tpu.dot_dimension_numbers<[1], [0], [0], [1], [0, 0, 1, 1], [], []>} : vector<3x32xbf16>, vector<32x32xbf16>, vector<3x32xf32> -> vector<3x32xf32>
      %c0_74 = arith.constant 0 : index
      %c0_75 = arith.constant 0 : index
      %150 = vector.load %arg19[%c0_74, %c0_75] : memref<1x32xf32, #tpu.memory_space<vmem>>, vector<1x32xf32>
      %151 = vector.broadcast %150 : vector<1x32xf32> to vector<3x32xf32>
      %152 = arith.addf %149, %151 : vector<3x32xf32>
      %153 = math.tanh %152 : vector<3x32xf32>
      %c0_76 = arith.constant 0 : index
      %c0_77 = arith.constant 0 : index
      %c0_78 = arith.constant 0 : index
      %154 = vector.load %arg20[%c0_76, %c0_77, %c0_78] : memref<1x3x32xf32, #tpu.memory_space<vmem>>, vector<1x3x32xf32>
      %155 = vector.shape_cast %154 : vector<1x3x32xf32> to vector<3x32xf32>
      %156 = vector.shape_cast %153 : vector<3x32xf32> to vector<1x3x32xf32>
      tpu.vector_store %arg20[%c0_76, %c0_77, %c0_78], %156 {strides = array<i32>} : memref<1x3x32xf32, #tpu.memory_space<vmem>>, vector<1x3x32xf32>,
    } else {
    }
    return
  }
  func.func @transform_0(%arg0: i32, %arg1: i32) -> (i32, i32, i32) {
    %c0_i32 = arith.constant 0 : i32
    %c0_i32_0 = arith.constant 0 : i32
    %c0_i32_1 = arith.constant 0 : i32
    return %arg0, %c0_i32, %c0_i32_0 : i32, i32, i32
  }
  func.func @transform_1(%arg0: i32, %arg1: i32) -> (i32, i32, i32) {
    %c0_i32 = arith.constant 0 : i32
    %c0_i32_0 = arith.constant 0 : i32
    %c0_i32_1 = arith.constant 0 : i32
    return %arg0, %c0_i32, %c0_i32_0 : i32, i32, i32
  }
  func.func @transform_2(%arg0: i32, %arg1: i32) -> (i32, i32) {
    %c0_i32 = arith.constant 0 : i32
    %c0_i32_0 = arith.constant 0 : i32
    %c0_i32_1 = arith.constant 0 : i32
    return %c0_i32, %c0_i32_0 : i32, i32
  }
  func.func @transform_3(%arg0: i32, %arg1: i32) -> (i32, i32) {
    %c0_i32 = arith.constant 0 : i32
    %c0_i32_0 = arith.constant 0 : i32
    %c0_i32_1 = arith.constant 0 : i32
    return %c0_i32, %c0_i32_0 : i32, i32
  }
  func.func @transform_4(%arg0: i32, %arg1: i32) -> (i32, i32, i32) {
    %c0_i32 = arith.constant 0 : i32
    %c0_i32_0 = arith.constant 0 : i32
    %c0_i32_1 = arith.constant 0 : i32
    return %arg1, %c0_i32, %c0_i32_0 : i32, i32, i32
  }
  func.func @transform_5(%arg0: i32, %arg1: i32) -> (i32, i32, i32) {
    %c0_i32 = arith.constant 0 : i32
    %c0_i32_0 = arith.constant 0 : i32
    %c0_i32_1 = arith.constant 0 : i32
    return %arg1, %c0_i32, %c0_i32_0 : i32, i32, i32
  }
  func.func @transform_6(%arg0: i32, %arg1: i32) -> (i32, i32, i32) {
    %c0_i32 = arith.constant 0 : i32
    %c0_i32_0 = arith.constant 0 : i32
    %c0_i32_1 = arith.constant 0 : i32
    return %arg1, %c0_i32, %c0_i32_0 : i32, i32, i32
  }
  func.func @transform_7(%arg0: i32, %arg1: i32) -> (i32, i32, i32) {
    %c0_i32 = arith.constant 0 : i32
    %c0_i32_0 = arith.constant 0 : i32
    %c0_i32_1 = arith.constant 0 : i32
    return %arg1, %c0_i32, %c0_i32_0 : i32, i32, i32
  }
  func.func @transform_8(%arg0: i32, %arg1: i32) -> (i32, i32, i32) {
    %c0_i32 = arith.constant 0 : i32
    %c0_i32_0 = arith.constant 0 : i32
    %c0_i32_1 = arith.constant 0 : i32
    return %arg1, %c0_i32, %c0_i32_0 : i32, i32, i32
  }
  func.func @transform_9(%arg0: i32, %arg1: i32) -> (i32, i32, i32) {
    %c0_i32 = arith.constant 0 : i32
    %c0_i32_0 = arith.constant 0 : i32
    %c0_i32_1 = arith.constant 0 : i32
    return %arg1, %c0_i32, %c0_i32_0 : i32, i32, i32
  }
  func.func @transform_10(%arg0: i32, %arg1: i32) -> (i32, i32, i32) {
    %c0_i32 = arith.constant 0 : i32
    %c0_i32_0 = arith.constant 0 : i32
    %c0_i32_1 = arith.constant 0 : i32
    return %arg1, %c0_i32, %c0_i32_0 : i32, i32, i32
  }
  func.func @transform_11(%arg0: i32, %arg1: i32) -> (i32, i32, i32) {
    %c0_i32 = arith.constant 0 : i32
    %c0_i32_0 = arith.constant 0 : i32
    %c0_i32_1 = arith.constant 0 : i32
    return %arg1, %c0_i32, %c0_i32_0 : i32, i32, i32
  }
  func.func @transform_12(%arg0: i32, %arg1: i32) -> (i32, i32, i32) {
    %c0_i32 = arith.constant 0 : i32
    %c0_i32_0 = arith.constant 0 : i32
    %c0_i32_1 = arith.constant 0 : i32
    return %arg1, %c0_i32, %c0_i32_0 : i32, i32, i32
  }
  func.func @transform_13(%arg0: i32, %arg1: i32) -> (i32, i32, i32) {
    %c0_i32 = arith.constant 0 : i32
    %c0_i32_0 = arith.constant 0 : i32
    %c0_i32_1 = arith.constant 0 : i32
    return %arg1, %c0_i32, %c0_i32_0 : i32, i32, i32
  }
  func.func @transform_14(%arg0: i32, %arg1: i32) -> (i32, i32, i32) {
    %c0_i32 = arith.constant 0 : i32
    %c0_i32_0 = arith.constant 0 : i32
    %c0_i32_1 = arith.constant 0 : i32
    return %arg1, %c0_i32, %c0_i32_0 : i32, i32, i32
  }
  func.func @transform_15(%arg0: i32, %arg1: i32) -> (i32, i32, i32) {
    %c0_i32 = arith.constant 0 : i32
    %c0_i32_0 = arith.constant 0 : i32
    %c0_i32_1 = arith.constant 0 : i32
    return %arg1, %c0_i32, %c0_i32_0 : i32, i32, i32
  }
  func.func @transform_16(%arg0: i32, %arg1: i32) -> (i32, i32) {
    %c0_i32 = arith.constant 0 : i32
    %c0_i32_0 = arith.constant 0 : i32
    %c0_i32_1 = arith.constant 0 : i32
    return %c0_i32, %c0_i32_0 : i32, i32
  }
  func.func @transform_17(%arg0: i32, %arg1: i32) -> (i32, i32) {
    %c0_i32 = arith.constant 0 : i32
    %c0_i32_0 = arith.constant 0 : i32
    %c0_i32_1 = arith.constant 0 : i32
    return %c0_i32, %c0_i32_0 : i32, i32
  }
  func.func @transform_18(%arg0: i32, %arg1: i32) -> (i32, i32, i32) {
    %c0_i32 = arith.constant 0 : i32
    %c0_i32_0 = arith.constant 0 : i32
    %c0_i32_1 = arith.constant 0 : i32
    return %arg0, %c0_i32, %c0_i32_0 : i32, i32, i32
  }
}

</mosaic_0001>

<bundles_post_ra>
// kernel: tpu_custom_call.1
= control target key start
LH: loop header
LB: loop body
LE: loop exit
PB: predicated region body
PF: predicated region fallthrough
CT: control target
= control target key end

     0   :  { %s3884_s0 = inlined_call_operand.hbm [shape: f32[2,8,32], index: 0, kind: input, shape index: {}]   ;;  %s3885_s1 = inlined_call_operand.hbm [shape: f32[2,1,8], index: 1, kind: input, shape index: {}]   ;;  %s3886_s2 = inlined_call_operand.vmem [shape: f32[1,32], index: 2, kind: input, shape index: {}]   ;;  %s3887_s3 = inlined_call_operand.hbm [shape: f32[1,32], index: 3, kind: input, shape index: {}]   ;;  %s3888_s4 = inlined_call_operand.vmem [shape: bf16[2,32,96], index: 4, kind: input, shape index: {}]   ;;  %s3889_s5 = inlined_call_operand.hbm [shape: f32[2,1,96], index: 5, kind: input, shape index: {}]   ;;  %s3890_s6 = inlined_call_operand.vmem [shape: bf16[2,32,32], index: 6, kind: input, shape index: {}]   ;;  %s3891_s7 = inlined_call_operand.hbm [shape: f32[2,1,32], index: 7, kind: input, shape index: {}]   ;;  %s3892_s8 = inlined_call_operand.hbm [shape: f32[2,1,32], index: 8, kind: input, shape index: {}]   ;;  %s3893_s9 = inlined_call_operand.hbm [shape: f32[2,1,32], index: 9, kind: input, shape index: {}]   ;;  %s3894_s10 = inlined_call_operand.vmem [shape: bf16[2,32,64], index: 10, kind: input, shape index: {}]   ;;  %s3895_s11 = inlined_call_operand.hbm [shape: f32[2,1,64], index: 11, kind: input, shape index: {}]   ;;  %s3896_s12 = inlined_call_operand.vmem [shape: bf16[2,64,32], index: 12, kind: input, shape index: {}]   ;;  %s3897_s13 = inlined_call_operand.hbm [shape: f32[2,1,32], index: 13, kind: input, shape index: {}]   ;;  %s3898_s14 = inlined_call_operand.vmem [shape: f32[2,1,32], index: 14, kind: input, shape index: {}]   ;;  %s3899_s15 = inlined_call_operand.vmem [shape: f32[2,1,32], index: 15, kind: input, shape index: {}]   ;;  %s3900_s16 = inlined_call_operand.vmem [shape: bf16[32,32], index: 16, kind: input, shape index: {}]   ;;  %s3901_s17 = inlined_call_operand.vmem [shape: f32[1,32], index: 17, kind: input, shape index: {}]   ;;  %s3902_s18 = inlined_call_operand.vmem [shape: f32[2,3,32], index: 18, kind: output, shape index: {}]  }
   0x1   :  { %3938 = sst [smem:[#allocation38_spill]] %s3884_s0 }
   0x2   :  { %3939 = sst [smem:[#allocation39_spill]] %s3885_s1 }
   0x3   :  { %3940 = sst [smem:[#allocation40_spill]] %s3886_s2 }
   0x4   :  { %3941 = sst [smem:[#allocation41_spill]] %s3887_s3 }
   0x5   :  { %3942 = sst [smem:[#allocation42_spill]] %s3888_s4 }
   0x6   :  { %3943 = sst [smem:[#allocation43_spill]] %s3889_s5 }
   0x7   :  { %3944 = sst [smem:[#allocation44_spill]] %s3890_s6 }
   0x8   :  { %3945 = sst [smem:[#allocation45_spill]] %s3891_s7 }
   0x9   :  { %3946 = sst [smem:[#allocation46_spill]] %s3892_s8 }
   0xa   :  { %3947 = sst [smem:[#allocation47_spill]] %s3893_s9 }
   0xb   :  { %3948 = sst [smem:[#allocation48_spill]] %s3894_s10 }
   0xc   :  { %3949 = sst [smem:[#allocation49_spill]] %s3895_s11 }
   0xd   :  { %3950 = sst [smem:[#allocation50_spill]] %s3896_s12 }
   0xe   :  { %3951 = sst [smem:[#allocation51_spill]] %s3897_s13 }
   0xf   :  { %3952 = sst [smem:[#allocation52_spill]] %s3898_s14 }
  0x10   :  { %3953 = sst [smem:[#allocation53_spill]] %s3899_s15 }
  0x11   :  { %3954 = sst [smem:[#allocation54_spill]] %s3900_s16 }
  0x12   :  { %3955 = sst [smem:[#allocation55_spill]] %s3901_s17 }
  0x13   :  { %3956 = sst [smem:[#allocation56_spill]] %s3902_s18 }
  0x14   :  { %23 = vsyncpa [#allocation5], 0 }
  0x15   :  { %25 = vsyncpa [#allocation5 + $0x1], 0 }
  0x16   :  { %26 = vsyncpa [#allocation7], 0 }
  0x17   :  { %28 = vsyncpa [#allocation7 + $0x1], 0 }
  0x18   :  { %29 = vsyncpa [#allocation10], 0 }
  0x19   :  { %31 = vsyncpa [#allocation10 + $0x1], 0 }
  0x1a   :  { %32 = vsyncpa [#allocation13], 0 }
  0x1b   :  { %34 = vsyncpa [#allocation13 + $0x1], 0 }
  0x1c   :  { %35 = vsyncpa [#allocation16], 0 }
  0x1d   :  { %37 = vsyncpa [#allocation16 + $0x1], 0  ;;  %s3211_s27 = smov 0   ;;  %s3213_s28 = smov 0  }
  0x1e   :  { %s3215_s29 = smov 0   ;;  %s3217_s30 = smov 0  }
  0x1f   :  { %s3219_s0 = smov 0   ;;  %s3221_s19 = smov 0  }
  0x20   :  { %s3223_s1 = smov 0   ;;  %s3225_s20 = smov 0  }
  0x21   :  { %s3227_s21 = smov 0   ;;  %s3229_s22 = smov 0  }
  0x22   :  { %s3231_s2 = smov 0  }
  0x23 LB: > { %3957 = sst [smem:[#allocation24_spill]] %s3065_s28  ;;  %s3905_s23 = sadd.s32 4294967295, %s3101_s2   ;;  %s3101_s2 = sphi %s3231_s2, %s43_s2   ;;  %s3097_s22 = sphi %s3229_s22, %s4045_s22   ;;  %s3093_s21 = sphi %s3227_s21, %s4044_s21   ;;  %s3089_s20 = sphi %s3225_s20, %s4043_s20   ;;  %s3085_s1 = sphi %s3223_s1, %s4042_s1   ;;  %s3081_s19 = sphi %s3221_s19, %s4041_s19   ;;  %s3077_s0 = sphi %s3219_s0, %s4040_s0   ;;  %s3073_s30 = sphi %s3217_s30, %s4039_s30   ;;  %s3069_s29 = sphi %s3215_s29, %s4038_s29   ;;  %s3065_s28 = sphi %s3213_s28, %s4037_s28   ;;  %s3061_s27 = sphi %s3211_s27, %s4036_s27  }
  0x24   : > { %3958 = sst [smem:[#allocation25_spill]] %s3069_s29  ;;  %p3909_p0 = scmp.eq.s32.totalorder %s3101_s2, 0 }
  0x25   : > { %3959 = sst [smem:[#allocation26_spill]] %s3077_s0  ;;  %p75_p1 = scmp.ne.s32.totalorder %s3077_s0, %s3073_s30 }
  0x26   : > { %3960 = sst [smem:[#allocation27_spill]] %s3081_s19  ;;  %p3267_p2 = scmp.eq.s32.totalorder %s3905_s23, 0 }
  0x27   : > { %3961 = sst [smem:[#allocation28_spill]] %s3085_s1  ;;  %p189_p3 = scmp.ne.s32.totalorder %s3069_s29, %s3065_s28 }
  0x28   : > { %3962 = sst [smem:[#allocation29_spill]] %s3089_s20  ;;  %p3276_p4 = por %p3267_p2, %p75_p1 }
  0x29   : > { %3963 = sst [smem:[#allocation30_spill]] %s3093_s21  ;;  %p195_p5 = scmp.ne.s32.totalorder %s3065_s28, %s3061_s27 }
  0x2a   : > { %3964 = sst [smem:[#allocation31_spill]] %s3097_s22  ;;  %p191_p6 = por %p189_p3, %p3909_p0 }
  0x2b   : > { %s3965_s24 = scalar_select %p3267_p2, 1, 0 }
  0x2c   : > { %s3967_s26 = scalar_select %p3276_p4, 1, 0 }
  0x2d   : > { %3966 = sst [smem:[#allocation32_spill]] %s3965_s24  ;;  %p2346_p7 = scmp.ge.s32.totalorder %s3101_s2, 1 }
  0x2e   : > { %p3286_p8 = por %p195_p5, %p3267_p2  ;;  %p534_p9 = scmp.lt.s32.totalorder %s3101_s2, 5 }
  0x2f   : > { %s3103_s25 = smov [#allocation8]   ;;  %p3908_p12 = scmp.lt.s32.totalorder %s3101_s2, 4 }
  0x30   : > { %s3968_s30 = scalar_select %p3286_p8, 1, 0 }
  0x31   : > { %p3291_p10 = pnand %p2346_p7, %p534_p9  ;;  %s550_s17 = sshll.u32 %s3103_s25, 4  ;;  %s551_s17 = int_to_ptr.vmem [resolvable:$true] %s550_s17 }
  0x32   : > { %3969 = sst [smem:[#allocation33_spill]] %s3968_s30  ;;  %s3299_s27 = sand.u32 1, %s3101_s2  }
  0x33   : > { %s3970_s23 = scalar_select %p3291_p10, 1, 0 }
  0x34   : > { %p2560_p11 = pneg %p3291_p10  ;;  %p3309_p1 = pnand %p3908_p12, %p191_p6 }
  0x35   : > { %s3973_s3 = sld [smem:[#allocation41_spill]] }
  0x36   : > { %p3303_p13 = pnand %p2560_p11, %p3267_p2 }
  0x37   : > { %s3972_s18 = scalar_select %p3309_p1, 1, 0 }
  0x38   : > { %p2725_p5 = pneg %p3303_p13 }
  0x3b   : > { %s2723_s25 = scalar_lea.hbm %s3973_s3, 16 }
  0x3c   : > { %p2724_p3 = scmp.ne.s32.totalorder %s3973_s3, %s2723_s25  ;;  %p2730_p11 = scmp.lt.u32.totalorder %s2723_s25, %s3973_s3 }
  0x3e   : > { %p2726_p7 = pnand %p2725_p5, %p2724_p3 }
  0x40   : > { %p2727_p9 = pneg %p2726_p7 }
  0x42   : > { %p2732_p6 = pnand %p2730_p11, %p2727_p9 }
  0x44   : > { %2735 = shalt.err (!%p2732_p6)
}
  0x45   : > { %s2736_s20 = scalar_lea.vmem %s551_s17, 16  ;;  %s2743_s14 = scalar_lea.vmem %s551_s17, 32 }
  0x46   : > { %p2737_p12 = scmp.ne.s32.totalorder %s551_s17, %s2736_s20  ;;  %p2744_p2 = scmp.lt.s32.totalorder %s551_s17, %s551_s17 }
  0x47   : > { %p2745_p4 = scmp.lt.s32.totalorder %s2743_s14, %s2736_s20 }
  0x48   : > { %p2739_p0 = pnand %p2737_p12, %p2725_p5 }
  0x49   : > { %p2746_p10 = por %p2745_p4, %p2744_p2 }
  0x4a   : > { %p2740_p8 = pneg %p2739_p0 }
  0x4c   : > { %p2747_p1 = pnand %p2746_p10, %p2740_p8 }
  0x4e   : > { %2750 = shalt.err (!%p2747_p1)
}
  0x4f   : > { %2563 = dma.hbm_to_vmem [thread:$0]  (!%p3303_p13), %s3973_s3, 16, %s551_s17, [#allocation7]  }
  0x50   : > { %s52_s4 = sadd.s32 1, %s3093_s21  ;;  %s3331_s6 = sand.u32 1, %s3069_s29  }
  0x51   : > { %p3333_p0 = scmp.ge.s32.totalorder %s52_s4, 2  ;;  %s3338_s16 = sshll.u32 %s3093_s21, 4 }
  0x52   : > { %s613_s20 = scalar_lea.vmem [#allocation9], %s3331_s6  ;;  %s3976_s5 = sld [smem:[#allocation43_spill]] }
  0x53   : > { %s3974_s15 = scalar_select %p3333_p0, 1, 0 }
  0x54   : > { %s620_s25 = sshll.u32 %s613_s20, 4  ;;  %s4047_s4 = smov (%p3333_p0, %s52_s4), 0  ;;  %s3351_s25 = int_to_ptr.vmem [resolvable:$true] %s620_s25 }
  0x55   : > { %3975 = sst [smem:[#allocation34_spill]] %s4047_s4  ;;  %s179_s12 = ssub.s32 %s3093_s21, %s4047_s4 }
  0x56   : > { %p3355_p2 = scmp.eq.s32.totalorder %s179_s12, 0  ;;  %p3978_p8 = scmp.ne.s32.totalorder %s3972_s18, 0 }
  0x58   : > { %s3349_s17 = scalar_lea.hbm %s3976_s5, %s3338_s16  ;;  %p3364_p10 = pneg %p3978_p8 }
  0x59   : > { %s3977_s3 = scalar_select %p3355_p2, 1, 0 }
  0x5a   : > { %s2751_s1 = scalar_lea.hbm %s3349_s17, 16  ;;  %s2756_s4 = scalar_lea.hbm %s3976_s5, 32 }
  0x5b   : > { %p2752_p4 = scmp.ne.s32.totalorder %s3349_s17, %s2751_s1  ;;  %p2757_p1 = scmp.lt.u32.totalorder %s3349_s17, %s3976_s5 }
  0x5c   : > { %s3979_s14 = scalar_select %p3364_p10, 1, 0 }
  0x5d   : > { %p2754_p12 = pnand %p3364_p10, %p2752_p4  ;;  %p2758_p3 = scmp.lt.u32.totalorder %s2756_s4, %s2751_s1 }
  0x5e   : > { %p2760_p7 = scmp.lt.u32.totalorder %s2751_s1, %s3349_s17 }
  0x5f   : > { %p2755_p13 = pneg %p2754_p12  ;;  %p2759_p5 = por %p2758_p3, %p2757_p1 }
  0x61   : > { %p2761_p9 = por %p2760_p7, %p2759_p5 }
  0x63   : > { %p2762_p11 = pnand %p2761_p9, %p2755_p13 }
  0x65   : > { %2765 = shalt.err (!%p2762_p11)
}
  0x66   : > { %s2766_s20 = scalar_lea.vmem %s3351_s25, 16  ;;  %s3104_s30 = smov [#allocation9]  }
  0x67   : > { %p2767_p6 = scmp.ne.s32.totalorder %s3351_s25, %s2766_s20  ;;  %s2771_s10 = sshll.u32 %s3104_s30, 4  ;;  %s2772_s10 = int_to_ptr.vmem [resolvable:$false] %s2771_s10 }
  0x68   : > { %s2773_s21 = scalar_lea.vmem %s2772_s10, 32  ;;  %p2774_p0 = scmp.lt.s32.totalorder %s3351_s25, %s2772_s10 }
  0x69   : > { %p2769_p4 = pnand %p2767_p6, %p3364_p10  ;;  %p2775_p2 = scmp.lt.s32.totalorder %s2773_s21, %s2766_s20 }
  0x6b   : > { %p2770_p12 = pneg %p2769_p4  ;;  %p2776_p1 = por %p2775_p2, %p2774_p0 }
  0x6d   : > { %p2777_p3 = pnand %p2776_p1, %p2770_p12 }
  0x6f   : > { %2780 = shalt.err (!%p2777_p3)
}
  0x70   : > { %s3980_s1 = scalar_lea.sflag [#allocation10], %s3299_s27  ;;  %s3981_s4 = sadd.s32 1, %s3069_s29 }
  0x71   : > { %2573 = dma.hbm_to_vmem [thread:$0]  (!%p3978_p8), %s3349_s17, 16, %s3351_s25, %s3980_s1  }
  0x72   : > { %p3982_p13 = scmp.ne.s32.totalorder %s3977_s3, 0  ;;  %s3984_s8 = sld [smem:[#allocation46_spill]] }
  0x73   : > { %s655_s21 = scalar_lea.vmem [#allocation12], %s3331_s6  ;;  %s3927_s28 = scalar_lea.sflag [#allocation13], %s3299_s27 }
  0x74   : > { %s3394_s20 = scalar_select %p3982_p13, %s3069_s29, %s3981_s4  }
  0x75   : > { %s662_s5 = sshll.u32 %s655_s21, 4  ;;  %s663_s5 = int_to_ptr.vmem [resolvable:$true] %s662_s5 }
  0x76   : > { %3983 = sst [smem:[#allocation35_spill]] %s3394_s20 }
  0x78   : > { %s3400_s10 = scalar_lea.hbm %s3984_s8, %s3338_s16  ;;  %s2786_s17 = scalar_lea.hbm %s3984_s8, 32 }
  0x79   : > { %s2781_s24 = scalar_lea.hbm %s3400_s10, 16  ;;  %p2787_p7 = scmp.lt.u32.totalorder %s3400_s10, %s3984_s8 }
  0x7a   : > { %p2782_p0 = scmp.ne.s32.totalorder %s3400_s10, %s2781_s24  ;;  %p2788_p9 = scmp.lt.u32.totalorder %s2786_s17, %s2781_s24 }
  0x7b   : > { %p2790_p6 = scmp.lt.u32.totalorder %s2781_s24, %s3400_s10 }
  0x7c   : > { %p2784_p2 = pnand %p2782_p0, %p3364_p10  ;;  %p2789_p11 = por %p2788_p9, %p2787_p7 }
  0x7e   : > { %p2785_p5 = pneg %p2784_p2  ;;  %p2791_p4 = por %p2790_p6, %p2789_p11 }
  0x80   : > { %p2792_p12 = pnand %p2791_p4, %p2785_p5 }
  0x82   : > { %2795 = shalt.err (!%p2792_p12)
}
  0x83   : > { %s2796_s12 = scalar_lea.vmem %s663_s5, 16  ;;  %s3105_s30 = smov [#allocation12]  }
  0x84   : > { %p2797_p1 = scmp.ne.s32.totalorder %s663_s5, %s2796_s12  ;;  %s2801_s21 = sshll.u32 %s3105_s30, 4  ;;  %s2802_s21 = int_to_ptr.vmem [resolvable:$false] %s2801_s21 }
  0x85   : > { %s2803_s3 = scalar_lea.vmem %s2802_s21, 32  ;;  %p2804_p0 = scmp.lt.s32.totalorder %s663_s5, %s2802_s21 }
  0x86   : > { %p2799_p3 = pnand %p2797_p1, %p3364_p10  ;;  %p2805_p2 = scmp.lt.s32.totalorder %s2803_s3, %s2796_s12 }
  0x88   : > { %p2800_p13 = pneg %p2799_p3  ;;  %p2806_p8 = por %p2805_p2, %p2804_p0 }
  0x8a   : > { %p2807_p7 = pnand %p2806_p8, %p2800_p13 }
  0x8c   : > { %2810 = shalt.err (!%p2807_p7)
}
  0x8d   : > { %p3985_p9 = scmp.ne.s32.totalorder %s3972_s18, 0  ;;  %s3986_s11 = sld [smem:[#allocation49_spill]] }
  0x8e   : > { %s697_s1 = scalar_lea.vmem [#allocation15], %s3331_s6  ;;  %s3928_s12 = scalar_lea.sflag [#allocation16], %s3299_s27 }
  0x8f   : > { %2579 = dma.hbm_to_vmem [thread:$0]  (!%p3985_p9), %s3400_s10, 16, %s663_s5, %s3927_s28  }
  0x90   : > { %s704_s4 = sshll.u32 %s697_s1, 4  ;;  %s705_s4 = int_to_ptr.vmem [resolvable:$true] %s704_s4 }
  0x93   : > { %s3427_s17 = scalar_lea.hbm %s3986_s11, %s3338_s16  ;;  %s2816_s10 = scalar_lea.hbm %s3986_s11, 32 }
  0x94   : > { %s2811_s30 = scalar_lea.hbm %s3427_s17, 16  ;;  %p2817_p6 = scmp.lt.u32.totalorder %s3427_s17, %s3986_s11 }
  0x95   : > { %p2812_p8 = scmp.ne.s32.totalorder %s3427_s17, %s2811_s30  ;;  %p2818_p4 = scmp.lt.u32.totalorder %s2816_s10, %s2811_s30 }
  0x96   : > { %p2820_p1 = scmp.lt.u32.totalorder %s2811_s30, %s3427_s17 }
  0x97   : > { %p2814_p5 = pnand %p2812_p8, %p3364_p10  ;;  %p2819_p12 = por %p2818_p4, %p2817_p6 }
  0x99   : > { %p2815_p11 = pneg %p2814_p5  ;;  %p2821_p3 = por %p2820_p1, %p2819_p12 }
  0x9b   : > { %p2822_p13 = pnand %p2821_p3, %p2815_p11 }
  0x9d   : > { %2825 = shalt.err (!%p2822_p13)
}
  0x9e   : > { %s2826_s25 = scalar_lea.vmem %s705_s4, 16  ;;  %s3106_s1 = smov [#allocation15]  }
  0x9f   : > { %p2827_p0 = scmp.ne.s32.totalorder %s705_s4, %s2826_s25  ;;  %s2831_s28 = sshll.u32 %s3106_s1, 4  ;;  %s2832_s28 = int_to_ptr.vmem [resolvable:$false] %s2831_s28 }
  0xa0   : > { %s2833_s21 = scalar_lea.vmem %s2832_s28, 32  ;;  %p2834_p8 = scmp.lt.s32.totalorder %s705_s4, %s2832_s28 }
  0xa1   : > { %p2829_p2 = pnand %p2827_p0, %p3364_p10  ;;  %p2835_p5 = scmp.lt.s32.totalorder %s2833_s21, %s2826_s25 }
  0xa3   : > { %p2830_p7 = pneg %p2829_p2  ;;  %p2836_p9 = por %p2835_p5, %p2834_p8 }
  0xa5   : > { %p2837_p4 = pnand %p2836_p9, %p2830_p7 }
  0xa7   : > { %2840 = shalt.err (!%p2837_p4)
}
  0xa8   : > { %p3987_p6 = scmp.ne.s32.totalorder %s3972_s18, 0  ;;  %s55_s28 = sadd.s32 1, %s3097_s22 }
  0xa9   : > { %s62_s30 = sadd.s32 1, %s3081_s19  ;;  %p3988_p9 = scmp.ne.s32.totalorder %s3974_s15, 0 }
  0xaa   : > { %2585 = dma.hbm_to_vmem [thread:$0]  (!%p3987_p6), %s3427_s17, 16, %s705_s4, %s3928_s12  }
  0xab   : > { %s4049_s28 = smov (!%p3988_p9, %s55_s28), %s3097_s22  ;;  %p69_p11 = scmp.ne.s32.totalorder %s3081_s19, %s3077_s0 }
  0xac   : > { %s3458_s5 = sand.u32 1, %s3081_s19   ;;  %p57_p12 = scmp.ge.s32.totalorder %s4049_s28, 2 }
  0xad   : > { %p3989_p1 = scmp.eq.s32.totalorder %s3101_s2, 0  ;;  %s2349_s10 = sshll.u32 %s3458_s5, 3 }
  0xae   : > { %s4051_s28 = smov (%p57_p12, %s4049_s28), 0  ;;  %s2350_s3 = sshll.u32 %s3097_s22, 7 }
  0xaf   : > { %p71_p3 = por %p3989_p1, %p69_p11  ;;  %3990 = sst [smem:[#allocation36_spill]] %s4051_s28 }
  0xb0   : > { %s59_s17 = ssub.s32 %s3097_s22, %s4051_s28  ;;  %s3991_s25 = sld [smem:[#allocation38_spill]] }
  0xb1   : > { %p60_p13 = scmp.eq.s32.totalorder %s59_s17, 0  ;;  %s571_s1 = scalar_lea.vmem [#allocation4], %s2349_s10 }
  0xb2   : > { %s578_s21 = sshll.u32 %s571_s1, 4  ;;  %p3992_p0 = scmp.lt.s32.totalorder %s3101_s2, 4  ;;  %s3473_s21 = int_to_ptr.vmem [resolvable:$true] %s578_s21 }
  0xb3   : > { %s3482_s8 = scalar_select %p60_p13, %s3081_s19, %s62_s30  }
  0xb4   : > { %p3477_p2 = pnand %p3992_p0, %p71_p3 }
  0xb5   : > { %3994 = sst [smem:[#allocation37_spill]] %s3482_s8 }
  0xb6   : > { %s3471_s15 = scalar_lea.hbm %s3991_s25, %s2350_s3  ;;  %s568_s3 = scalar_lea.sflag [#allocation5], %s3458_s5 }
  0xb7   : > { %s2841_s4 = scalar_lea.hbm %s3471_s15, 128  ;;  %p2843_p8 = pneg %p3477_p2 }
  0xb8   : > { %p2842_p7 = scmp.ne.s32.totalorder %s3471_s15, %s2841_s4  ;;  %s2846_s24 = scalar_lea.hbm %s3991_s25, 256 }
  0xb9   : > { %p2847_p9 = scmp.lt.u32.totalorder %s3471_s15, %s3991_s25  ;;  %p2848_p11 = scmp.lt.u32.totalorder %s2846_s24, %s2841_s4 }
  0xba   : > { %p2844_p5 = pnand %p2843_p8, %p2842_p7  ;;  %p2850_p1 = scmp.lt.u32.totalorder %s2841_s4, %s3471_s15 }
  0xbb   : > { %p2849_p12 = por %p2848_p11, %p2847_p9 }
  0xbc   : > { %p2845_p4 = pneg %p2844_p5 }
  0xbd   : > { %p2851_p3 = por %p2850_p1, %p2849_p12 }
  0xbf   : > { %p2852_p13 = pnand %p2851_p3, %p2845_p4 }
  0xc1   : > { %2855 = shalt.err (!%p2852_p13)
}
  0xc2   : > { %s2856_s30 = scalar_lea.vmem %s3473_s21, 128  ;;  %s3107_s10 = smov [#allocation4]  }
  0xc3   : > { %p2857_p0 = scmp.ne.s32.totalorder %s3473_s21, %s2856_s30  ;;  %s2861_s17 = sshll.u32 %s3107_s10, 4  ;;  %s2862_s17 = int_to_ptr.vmem [resolvable:$false] %s2861_s17 }
  0xc4   : > { %s2863_s11 = scalar_lea.vmem %s2862_s17, 256  ;;  %p2864_p6 = scmp.lt.s32.totalorder %s3473_s21, %s2862_s17 }
  0xc5   : > { %p2859_p7 = pnand %p2857_p0, %p2843_p8  ;;  %p2865_p9 = scmp.lt.s32.totalorder %s2863_s11, %s2856_s30 }
  0xc7   : > { %p2860_p5 = pneg %p2859_p7  ;;  %p2866_p11 = por %p2865_p9, %p2864_p6 }
  0xc9   : > { %p2867_p12 = pnand %p2866_p11, %p2860_p5 }
  0xcb   : > { %2870 = shalt.err (!%p2867_p12)
}
  0xcc   : > { %2567 = dma.hbm_to_vmem [thread:$0]  (!%p3477_p2), %s3471_s15, 128, %s3473_s21, %s568_s3  }
  0xcd   : > { %s2351_s4 = sshll.u32 %s3097_s22, 4  ;;  %s3995_s10 = sld [smem:[#allocation39_spill]] }
  0xce   : > { %s588_s30 = scalar_lea.vmem [#allocation6], %s3458_s5  ;;  %s586_s11 = scalar_lea.sflag [#allocation7], %s3299_s27 }
  0xcf   : > { %s595_s17 = sshll.u32 %s588_s30, 4  ;;  %s596_s17 = int_to_ptr.vmem [resolvable:$true] %s595_s17 }
  0xd3   : > { %s3514_s25 = scalar_lea.hbm %s3995_s10, %s2351_s4  ;;  %s2876_s3 = scalar_lea.hbm %s3995_s10, 32 }
  0xd4   : > { %s2871_s28 = scalar_lea.hbm %s3514_s25, 16  ;;  %p2877_p3 = scmp.lt.u32.totalorder %s3514_s25, %s3995_s10 }
  0xd5   : > { %p2872_p6 = scmp.ne.s32.totalorder %s3514_s25, %s2871_s28  ;;  %p2878_p13 = scmp.lt.u32.totalorder %s2876_s3, %s2871_s28 }
  0xd6   : > { %p2880_p7 = scmp.lt.u32.totalorder %s2871_s28, %s3514_s25 }
  0xd7   : > { %p2874_p4 = pnand %p2872_p6, %p2843_p8  ;;  %p2879_p0 = por %p2878_p13, %p2877_p3 }
  0xd9   : > { %p2875_p1 = pneg %p2874_p4  ;;  %p2881_p5 = por %p2880_p7, %p2879_p0 }
  0xdb   : > { %p2882_p9 = pnand %p2881_p5, %p2875_p1 }
  0xdd   : > { %2885 = shalt.err (!%p2882_p9)
}
  0xde   : > { %s2886_s5 = scalar_lea.vmem %s596_s17, 16  ;;  %s3108_s1 = smov [#allocation6]  }
  0xdf   : > { %p2887_p11 = scmp.ne.s32.totalorder %s596_s17, %s2886_s5  ;;  %s2891_s30 = sshll.u32 %s3108_s1, 4  ;;  %s2892_s30 = int_to_ptr.vmem [resolvable:$false] %s2891_s30 }
  0xe0   : > { %s2893_s15 = scalar_lea.vmem %s2892_s30, 32  ;;  %p2894_p4 = scmp.lt.s32.totalorder %s596_s17, %s2892_s30 }
  0xe1   : > { %p2889_p12 = pnand %p2887_p11, %p2843_p8  ;;  %p2895_p10 = scmp.lt.s32.totalorder %s2893_s15, %s2886_s5 }
  0xe3   : > { %p2890_p6 = pneg %p2889_p12  ;;  %p2896_p3 = por %p2895_p10, %p2894_p4 }
  0xe5   : > { %p2897_p13 = pnand %p2896_p3, %p2890_p6 }
  0xe7   : > { %2900 = shalt.err (!%p2897_p13)
}
  0xe8   : > { %2570 = dma.hbm_to_vmem [thread:$0]  (!%p3477_p2), %s3514_s25, 16, %s596_s17, %s586_s11  }
  0xe9   : > { %s3996_s7 = sld [smem:[#allocation45_spill]]  ;;  %s638_s4 = scalar_lea.vmem [#allocation11], %s3331_s6 }
  0xea   : > { %s645_s24 = sshll.u32 %s638_s4, 4  ;;  %p3997_p8 = scmp.ne.s32.totalorder %s3979_s14, 0  ;;  %s646_s24 = int_to_ptr.vmem [resolvable:$true] %s645_s24 }
  0xef   : > { %s3541_s3 = scalar_lea.hbm %s3996_s7, %s3338_s16  ;;  %s2906_s25 = scalar_lea.hbm %s3996_s7, 32 }
  0xf0   : > { %s2901_s5 = scalar_lea.hbm %s3541_s3, 16  ;;  %p2907_p2 = scmp.lt.u32.totalorder %s3541_s3, %s3996_s7 }
  0xf1   : > { %p2902_p10 = scmp.ne.s32.totalorder %s3541_s3, %s2901_s5  ;;  %p2908_p7 = scmp.lt.u32.totalorder %s2906_s25, %s2901_s5 }
  0xf2   : > { %p2910_p9 = scmp.lt.u32.totalorder %s2901_s5, %s3541_s3 }
  0xf3   : > { %p2904_p1 = pnand %p2902_p10, %p3997_p8  ;;  %p2909_p5 = por %p2908_p7, %p2907_p2 }
  0xf5   : > { %p2905_p0 = pneg %p2904_p1  ;;  %p2911_p11 = por %p2910_p9, %p2909_p5 }
  0xf7   : > { %p2912_p12 = pnand %p2911_p11, %p2905_p0 }
  0xf9   : > { %2915 = shalt.err (!%p2912_p12)
}
  0xfa   : > { %s2916_s30 = scalar_lea.vmem %s646_s24, 16  ;;  %s3109_s15 = smov [#allocation11]  }
  0xfb   : > { %p2917_p6 = scmp.ne.s32.totalorder %s646_s24, %s2916_s30  ;;  %s2921_s28 = sshll.u32 %s3109_s15, 4  ;;  %s2922_s28 = int_to_ptr.vmem [resolvable:$false] %s2921_s28 }
  0xfc   : > { %s2923_s21 = scalar_lea.vmem %s2922_s28, 32  ;;  %p2924_p13 = scmp.lt.s32.totalorder %s646_s24, %s2922_s28 }
  0xfd   : > { %p2919_p4 = pnand %p2917_p6, %p3997_p8  ;;  %p2925_p10 = scmp.lt.s32.totalorder %s2923_s21, %s2916_s30 }
  0xff   : > { %p2920_p3 = pneg %p2919_p4  ;;  %p2926_p1 = por %p2925_p10, %p2924_p13 }
 0x101   : > { %p2927_p2 = pnand %p2926_p1, %p2920_p3 }
 0x103   : > { %2930 = shalt.err (!%p2927_p2)
}
 0x104   : > { %p3998_p7 = scmp.ne.s32.totalorder %s3972_s18, 0  ;;  %s3999_s4 = scalar_lea.sflag [#allocation10], %s3299_s27 }
 0x105   : > { %s4000_s9 = sld [smem:[#allocation47_spill]]  ;;  %s672_s25 = scalar_lea.vmem [#allocation14], %s3331_s6 }
 0x106   : > { %2576 = dma.hbm_to_vmem [thread:$0]  (!%p3998_p7), %s3541_s3, 16, %s646_s24, %s3999_s4  }
 0x107   : > { %s679_s17 = sshll.u32 %s672_s25, 4  ;;  %s680_s17 = int_to_ptr.vmem [resolvable:$true] %s679_s17 }
 0x10b   : > { %s3567_s1 = scalar_lea.hbm %s4000_s9, %s3338_s16  ;;  %s2936_s3 = scalar_lea.hbm %s4000_s9, 32 }
 0x10c   : > { %s2931_s11 = scalar_lea.hbm %s3567_s1, 16  ;;  %p2937_p11 = scmp.lt.u32.totalorder %s3567_s1, %s4000_s9 }
 0x10d   : > { %p2932_p0 = scmp.ne.s32.totalorder %s3567_s1, %s2931_s11  ;;  %p2938_p12 = scmp.lt.u32.totalorder %s2936_s3, %s2931_s11 }
 0x10e   : > { %p2940_p4 = scmp.lt.u32.totalorder %s2931_s11, %s3567_s1 }
 0x10f   : > { %p2934_p5 = pnand %p2932_p0, %p3997_p8  ;;  %p2939_p6 = por %p2938_p12, %p2937_p11 }
 0x111   : > { %p2935_p9 = pneg %p2934_p5  ;;  %p2941_p3 = por %p2940_p4, %p2939_p6 }
 0x113   : > { %p2942_p13 = pnand %p2941_p3, %p2935_p9 }
 0x115   : > { %2945 = shalt.err (!%p2942_p13)
}
 0x116   : > { %s2946_s21 = scalar_lea.vmem %s680_s17, 16  ;;  %s3110_s4 = smov [#allocation14]  }
 0x117   : > { %p2947_p10 = scmp.ne.s32.totalorder %s680_s17, %s2946_s21  ;;  %s2951_s5 = sshll.u32 %s3110_s4, 4  ;;  %s2952_s5 = int_to_ptr.vmem [resolvable:$false] %s2951_s5 }
 0x118   : > { %s2953_s12 = scalar_lea.vmem %s2952_s5, 32  ;;  %p2954_p0 = scmp.lt.s32.totalorder %s680_s17, %s2952_s5 }
 0x119   : > { %p2949_p1 = pnand %p2947_p10, %p3997_p8  ;;  %p2955_p5 = scmp.lt.s32.totalorder %s2953_s12, %s2946_s21 }
 0x11b   : > { %p2950_p2 = pneg %p2949_p1  ;;  %p2956_p7 = por %p2955_p5, %p2954_p0 }
 0x11d   : > { %p2957_p11 = pnand %p2956_p7, %p2950_p2 }
 0x11f   : > { %2960 = shalt.err (!%p2957_p11)
}
 0x120   : > { %p4001_p12 = scmp.ne.s32.totalorder %s3972_s18, 0  ;;  %s4002_s25 = scalar_lea.sflag [#allocation13], %s3299_s27 }
 0x121   : > { %s4003_s13 = sld [smem:[#allocation51_spill]]  ;;  %s722_s3 = scalar_lea.vmem [#allocation17], %s3331_s6 }
 0x122   : > { %2582 = dma.hbm_to_vmem [thread:$0]  (!%p4001_p12), %s3567_s1, 16, %s680_s17, %s4002_s25  }
 0x123   : > { %s729_s24 = sshll.u32 %s722_s3, 4  ;;  %s730_s24 = int_to_ptr.vmem [resolvable:$true] %s729_s24 }
 0x127   : > { %s3593_s15 = scalar_lea.hbm %s4003_s13, %s3338_s16  ;;  %s2966_s1 = scalar_lea.hbm %s4003_s13, 32 }
 0x128   : > { %s2961_s28 = scalar_lea.hbm %s3593_s15, 16  ;;  %p2967_p4 = scmp.lt.u32.totalorder %s3593_s15, %s4003_s13 }
 0x129   : > { %p2962_p7 = scmp.ne.s32.totalorder %s3593_s15, %s2961_s28  ;;  %p2968_p3 = scmp.lt.u32.totalorder %s2966_s1, %s2961_s28 }
 0x12a   : > { %p2970_p10 = scmp.lt.u32.totalorder %s2961_s28, %s3593_s15 }
 0x12b   : > { %p2964_p9 = pnand %p2962_p7, %p3997_p8  ;;  %p2969_p13 = por %p2968_p3, %p2967_p4 }
 0x12d   : > { %p2965_p6 = pneg %p2964_p9  ;;  %p2971_p1 = por %p2970_p10, %p2969_p13 }
 0x12f   : > { %p2972_p2 = pnand %p2971_p1, %p2965_p6 }
 0x131   : > { %2975 = shalt.err (!%p2972_p2)
}
 0x132   : > { %s2976_s6 = scalar_lea.vmem %s730_s24, 16  ;;  %s3111_s16 = smov [#allocation17]  }
 0x133   : > { %p2977_p0 = scmp.ne.s32.totalorder %s730_s24, %s2976_s6  ;;  %s2981_s12 = sshll.u32 %s3111_s16, 4  ;;  %s2982_s12 = int_to_ptr.vmem [resolvable:$false] %s2981_s12 }
 0x134   : > { %s2983_s25 = scalar_lea.vmem %s2982_s12, 32  ;;  %p2984_p7 = scmp.lt.s32.totalorder %s730_s24, %s2982_s12 }
 0x135   : > { %p2979_p5 = pnand %p2977_p0, %p3997_p8  ;;  %p2985_p9 = scmp.lt.s32.totalorder %s2983_s25, %s2976_s6 }
 0x137   : > { %p2980_p11 = pneg %p2979_p5  ;;  %p2986_p12 = por %p2985_p9, %p2984_p7 }
 0x139   : > { %p2987_p3 = pnand %p2986_p12, %p2980_p11 }
 0x13b   : > { %2990 = shalt.err (!%p2987_p3)
}
 0x13c   : > { %p4004_p4 = scmp.ne.s32.totalorder %s3972_s18, 0  ;;  %s4005_s11 = scalar_lea.sflag [#allocation16], %s3299_s27 }
 0x13d   : > { %p4006_p6 = scmp.ne.s32.totalorder %s3970_s23, 0 }
 0x13e   : > { %2588 = dma.hbm_to_vmem [thread:$0]  (!%p4004_p4), %s3593_s15, 16, %s730_s24, %s4005_s11  }
 0x13f   : > { %750 = sbr.rel (%p4006_p6) target bundleno = 3595 (0xe0b), region = 92  ;;  %s3618_s14 = sand.u32 (!%p4006_p6), 1, %s3077_s0  }
 0x140   : > { %s2359_s30 = sshll.u32 (!%p4006_p6), %s3618_s14, 3  ;;  %s753_s3 = scalar_lea.sflag (!%p4006_p6), [#allocation5], %s3618_s14 }
 0x141   : > { %s3622_s28 = scalar_lea.vmem (!%p4006_p6), [#allocation4], %s2359_s30  ;;  %p4007_p8 = scmp.ne.s32.totalorder (!%p4006_p6), %s3967_s26, 0 }
 0x146   : > { %3036 = dma.done.wait (%p4007_p8), %s753_s3, 128  }
 0x147   : > { %3038 = vsyncadd (%p4007_p8), %s753_s3, 4294967168  ;;  %s4008_s18 = sadd.s32 4294967295, %s3101_s2  }
 0x148   : > { %s761_s23 = sand.u32 1, %s4008_s18  }
 0x149   : > { %s762_s27 = scalar_lea.sflag [#allocation7], %s761_s23 }
 0x14a   : > { %3040 = dma.done.wait (%p4007_p8), %s762_s27, 16  }
 0x14b   : > { %3042 = vsyncadd (%p4007_p8), %s762_s27, 4294967280  ;;  %s4009_s24 = sld [smem:[#allocation32_spill]] }
 0x151   : > { %p4010_p12 = scmp.ne.s32.totalorder %s4009_s24, 0 }
 0x153   : > { %3044 = dma.done.wait (%p4010_p12), [#allocation7], 16  }
 0x154   : > { %3046 = vsyncadd (%p4010_p12), [#allocation7], 4294967280  ;;  %s4011_s21 = sld [smem:[#allocation24_spill]]  ;;  %s4012_s4 = sld [smem:[#allocation33_spill]] }
 0x155   : > { %s774_s17 = scalar_lea.sflag [#allocation10], %s761_s23 }
 0x15a   : > { %s3640_s1 = sand.u32 1, %s4011_s21   ;;  %p4013_p13 = scmp.ne.s32.totalorder %s4012_s4, 0 }
 0x15c   : > { %3048 = dma.done.wait (%p4013_p13), %s774_s17, 32  }
 0x15d   : > { %3050 = vsyncadd (%p4013_p13), %s774_s17, 4294967264  ;;  %s790_s6 = scalar_lea.sflag [#allocation13], %s761_s23 }
 0x15e   : > { %3052 = dma.done.wait (%p4013_p13), %s790_s6, 32  }
 0x15f   : > { %3054 = vsyncadd (%p4013_p13), %s790_s6, 4294967264  ;;  %s806_s25 = scalar_lea.sflag [#allocation16], %s761_s23 }
 0x160   : > { %3056 = dma.done.wait (%p4013_p13), %s806_s25, 32  }
 0x161   : > { %3058 = vsyncadd (%p4013_p13), %s806_s25, 4294967264  ;;  %s4014_s30 = sld [smem:[#allocation28_spill]]  ;;  %s4015_s3 = sld [smem:[#allocation29_spill]] }
 0x162   : > { %s4016_s4 = sld [smem:[#allocation42_spill]]  ;;  %s4017_s11 = sld [smem:[#allocation44_spill]] }
 0x163   : > { %s4018_s15 = sld [smem:[#allocation48_spill]]  ;;  %s4019_s10 = sld [smem:[#allocation50_spill]] }
 0x164   : > { %s4020_s24 = sld [smem:[#allocation52_spill]]  ;;  %s4021_s0 = sld [smem:[#allocation53_spill]] }
 0x165   : > { %s4022_s29 = sld [smem:[#allocation56_spill]] }
 0x167   : > { %p922_p10 = scmp.lt.s32.totalorder %s4014_s30, 1  ;;  %p948_p1 = scmp.lt.s32.totalorder %s4015_s3, 1 }
 0x168   : > { %p2370_p2 = scmp.ne.s32.totalorder %s4014_s30, 0 }
 0x169   : > { %s3662_s18 = scalar_select %p922_p10, %s4014_s30, 1 }
 0x16a   : > { %s4053_s3 = smov (!%p948_p1, %s4015_s3), 1  ;;  %956 = sbr.rel (%p2370_p2) target bundleno = 679 (0x2a7), region = 132 }
 0x16b   : > { %s2411_s23 = sshll.u32 %s3662_s18, 4  ;;  %s2414_s27 = sshll.u32 %s3662_s18, 5  ;;  %v957_v0 = vld [vmem:[%s3622_s28] sm:$0xff] (!%p2370_p2)  ;;  %vm960_vm0 = vcmask (!%p2370_p2), 261120   ;;  %v2372_v13 = vld [vmem:[#allocation8] ss:$0 sm:$0xff] (!%p2370_p2) }
 0x16c   : > { %s3670_s17 = scalar_lea.vmem %s4016_s4, %s2411_s23  ;;  %s3675_s12 = scalar_lea.vmem %s4017_s11, %s2411_s23  ;;  %v961_v1 = vsel (!%p2370_p2), %vm960_vm0, %v957_v0, 0.0  ;;  %vm990_vm1 = vcmask (!%p2370_p2), 253952  }
 0x16d   : > { %s3680_s5 = scalar_lea.vmem %s4018_s15, %s2411_s23  ;;  %s3685_s13 = scalar_lea.vmem %s4019_s10, %s2414_s27  ;;  %962 = vadd.xlane.f32.xlu0 (!%p2370_p2), %v961_v1 }
 0x16e   : > { %s944_s21 = scalar_lea.vmem %s4020_s24, %s3662_s18  ;;  %s947_s6 = scalar_lea.vmem %s4021_s0, %s3662_s18 }
 0x16f   : > { %s2369_s11 = sshll.u32 %s4053_s3, 2  ;;  %s816_s15 = scalar_lea.vmem [#allocation17], %s3640_s1 }
 0x170   : > { %s3698_s26 = scalar_lea.vmem %s4022_s29, %s2369_s11  ;;  %s4023_s9 = sld [smem:[#allocation40_spill]] (!%p2370_p2) }
 0x176   : > { %v2371_v11 = vld [vmem:[%s4023_s9] ss:$0 sm:$0xff] }
 0x1fa   : > { %v963_v2 = vpop.xlane.xlu0 %962 }
 0x1fb   : > { %v965_v3 = vmul.f32 0.03125, %v963_v2 }
 0x1fd   : > { %v966_v4 = vsub.f32 %v957_v0, %v965_v3 }
 0x1ff   : > { %v967_v5 = vmul.f32 %v966_v4, %v966_v4 }
 0x201   : > { %v968_v6 = vsel %vm960_vm0, %v967_v5, 0.0 }
 0x202   : > { %969 = vadd.xlane.f32.xlu0 %v968_v6 }
 0x28f   : > { %v970_v7 = vpop.xlane.xlu0 %969 }
 0x290   : > { %v971_v8 = vmul.f32 0.03125, %v970_v7 }
 0x292   : > { %v972_v9 = vadd.f32 1e-05, %v971_v8 }
 0x294   : > { %2685 = vrsqrt.f32 %v972_v9 }
 0x29e   : > { %v2686_v10 = vpop.eup %2685 }
 0x29f   : > { %v974_v12 = vmul.f32 %v2686_v10, %v966_v4 }
 0x2a1   : > { %v981_v14 = vmul.f32 %v2371_v11, %v974_v12 }
 0x2a3   : > { %v988_v15 = vadd.f32 %v2372_v13, %v981_v14 }
 0x2a5   : > { %989 = vst.msk [vmem:[#allocation2] sm:$0xff] %vm960_vm0, %v988_v15 }
 0x2a6   : > { %991 = vst.msk [vmem:[#allocation3] sm:$0x1] %vm990_vm1, %v988_v15 }
 0x2a7 PF: > { %v2687_v16 = vld [vmem:[%s3670_s17] sm:$0xff]   ;;  %v3112_v17 = vmov 0.0   ;;  %v2688_v18 = vld [vmem:[%s3670_s17 + $0x8] sm:$0xff]   ;;  %vm3113_vm2 = vmmov 0   ;;  %vm1017_vm3 = vcmask 261120   ;;  %s4024_s29 = scalar_lea.vmem [#allocation9], %s3640_s1  ;;  %v1233_v55 = vlaneseq }
 0x2a8   : > { %2448 = vmatprep.subr.bf16.mxu0 %v3112_v17  ;;  %2456 = vmatprep.subr.bf16.mxu1 %v3112_v17  ;;  %v2373_v21 = vld [vmem:[%s4024_s29] ss:$0 sm:$0xff]  ;;  %vm1242_vm4 = vcmask 1043456   ;;  %vm1238_vm5 = vcmask 64512   ;;  %s4025_s0 = scalar_lea.vmem [#allocation6], %s3618_s14  ;;  %s4026_s19 = scalar_lea.vmem [#allocation11], %s3640_s1 }
 0x2a9   : > { %2449 = vmatpush3.bf16.msra.mxu0 %v2687_v16  ;;  %2452 = vmatprep.mubr.msk.bf16.mxu0 %vm3113_vm2, %v3112_v17  ;;  %v1221_v56 = vld [vmem:[%s4025_s0] sm:$0x1]  ;;  %v1234_v58 = vshrl.u32 %v1233_v55, 7  ;;  %s4027_s22 = scalar_lea.vmem [#allocation12], %s3640_s1  ;;  %s4028_s20 = scalar_lea.vmem [#allocation14], %s3640_s1  ;;  %vm1906_vm6 = vcmask 523264  }
 0x2aa   : > { %2450 = vmatprep.subr.bf16.mxu0 %v3112_v17  ;;  %2458 = vmatprep.mubr.msk.bf16.mxu1 %vm3113_vm2, %v3112_v17  ;;  %v1222_v57 = vsub.f32 1.0, %v1221_v56  ;;  %s4029_s10 = scalar_lea.vmem [#allocation15], %s3640_s1  ;;  %vm1983_vm7 = vcmask 253952  }
 0x2ab   : > { %v1235_v60 = vsub.s32 0, %v1234_v58 }
 0x2ac   : > { %v3715_v19 = vld [vmem:[#allocation2] sm:$0xff]  ;;  %v1223_v59 = vmul.f32 -1e+09, %v1222_v57 }
 0x2ad   : > { %v993_v20 = vpack.c.bf16 %v3715_v19, %v3715_v19  ;;  %2451 = vmatpush3.bf16.msra.mxu0 %v2688_v18 }
 0x2ae   : > { %2480 = vmatprep.subr.bf16.mxu0 %v3112_v17  ;;  %v1236_v61 = vrot.slane %v1223_v59, %v1235_v60 }
 0x2b0   : > { %2453 = vmatmul.mubr.msk.bf16.vlgmr.msra.gmra.mrb[0].mxu0 %vm1017_vm3, %v993_v20 }
 0x2b1   : > { %2482 = vmatprep.mubr.msk.bf16.mxu0 %vm3113_vm2, %v3112_v17 }
 0x383   : > { %v1055_v22 = vpop.f32.mrb[0].mxu0 }
 0x384   : > { %v2454_v23 = vpop.f32.mrb[1].mxu0  ;;  %v1056_v24 = vadd.f32 %v2373_v21, %v1055_v22 }
 0x385   : > { %v1058_v25 = vpop.f32.mrb[2].mxu0 }
 0x386   : > { %1061 = vxpose.xlu0.b32.start.end [1/1] (short) (narrow) %v1056_v24, 96  ;;  %v2455_v26 = vpop.f32.mrb[3].mxu0 }
 0x406   : > { %v1077_v27 = vpop.trf.xlu0 }
 0x407   : > { %1093 = vxpose.xlu0.b32.start.end [1/1] (short) (narrow) %v1077_v27, 8 }
 0x40a   : > { %v1078_v28 = vpop.trf.xlu0 }
 0x40b   : > { %1125 = vxpose.xlu1.b32.start.end [1/1] (short) (narrow) %v1078_v28, 8 }
 0x40e   : > { %v1079_v29 = vpop.trf.xlu0 }
 0x40f   : > { %1157 = vxpose.xlu1.b32.start.end [1/1] (short) (narrow) %v1079_v29, 8 }
 0x412   : > { %v1080_v30 = vpop.trf.xlu0 }
 0x413   : > { %1189 = vxpose.xlu1.b32.start.end [1/1] (short) (narrow) %v1080_v30, 8 }
 0x416   : > { %v1081_v31 = vpop.trf.xlu0 }
 0x417   : > { %v1228_v32 = vpack.c.bf16 %v1081_v31, %v1081_v31 }
 0x419   : > { %v1244_v33 = vsel %vm1242_vm4, %v1228_v32, 0 }
 0x41a   : > { %2457 = vmatpush3.bf16.msra.mxu1 %v1244_v33  ;;  %v1082_v34 = vpop.trf.xlu0 }
 0x41b   : > { %2462 = vmatprep.subr.bf16.mxu1 %v3112_v17  ;;  %v1229_v41 = vpack.c.bf16 %v1082_v34, %v1082_v34 }
 0x41d   : > { %v1290_v44 = vsel %vm1242_vm4, %v1229_v41, 0 }
 0x41e   : > { %v1083_v35 = vpop.trf.xlu0 }
 0x41f   : > { %v1230_v46 = vpack.c.bf16 %v1083_v35, %v1083_v35 }
 0x421   : > { %v1336_v48 = vsel %vm1242_vm4, %v1230_v46, 0 }
 0x422   : > { %v1084_v36 = vpop.trf.xlu0 }
 0x423   : > { %v1231_v50 = vpack.c.bf16 %v1084_v36, %v1084_v36 }
 0x425   : > { %v1382_v52 = vsel %vm1242_vm4, %v1231_v50, 0 }
 0x426   : > { %v3730_v37 = vpop.trf.xlu0 }
 0x427   : > { %v1468_v57 = vpack.c.bf16 %v3730_v37, %v3730_v37 }
 0x42a   : > { %v3732_v38 = vpop.trf.xlu0 }
 0x42e   : > { %v3734_v39 = vpop.trf.xlu0 }
 0x432   : > { %v3736_v40 = vpop.trf.xlu0 }
 0x487   : > { %v1109_v42 = vpop.trf.xlu0 }
 0x488   : > { %v1224_v43 = vpack.c.bf16 %v1109_v42, %v1109_v42 }
 0x48a   : > { %2459 = vmatmul.mubr.msk.bf16.vlgmr.msra.gmra.mrb[0].mxu1 %vm1238_vm5, %v1224_v43 }
 0x48b   : > { %2463 = vmatpush3.bf16.msra.mxu1 %v1290_v44  ;;  %v1141_v45 = vpop.trf.xlu1  ;;  %2464 = vmatprep.mubr.msk.bf16.mxu1 %vm3113_vm2, %v3112_v17 }
 0x48c   : > { %2468 = vmatprep.subr.bf16.mxu1 %v3112_v17  ;;  %v1225_v47 = vpack.c.bf16 %v1141_v45, %v1141_v45 }
 0x48f   : > { %v1173_v49 = vpop.trf.xlu1 }
 0x490   : > { %v1226_v51 = vpack.c.bf16 %v1173_v49, %v1173_v49 }
 0x492   : > { %2465 = vmatmul.mubr.msk.bf16.vlgmr.msra.gmra.mrb[4].mxu1 %vm1238_vm5, %v1225_v47 }
 0x493   : > { %2469 = vmatpush3.bf16.msra.mxu1 %v1336_v48  ;;  %2470 = vmatprep.mubr.msk.bf16.mxu1 %vm3113_vm2, %v3112_v17  ;;  %v1205_v53 = vpop.trf.xlu1 }
 0x494   : > { %2474 = vmatprep.subr.bf16.mxu1 %v3112_v17  ;;  %v1227_v54 = vpack.c.bf16 %v1205_v53, %v1205_v53 }
 0x49a   : > { %2471 = vmatmul.mubr.msk.bf16.vlgmr.msra.gmra.mrb[8].mxu1 %vm1238_vm5, %v1226_v51 }
 0x49b   : > { %2475 = vmatpush3.bf16.msra.mxu1 %v1382_v52  ;;  %2476 = vmatprep.mubr.msk.bf16.mxu1 %vm3113_vm2, %v3112_v17 }
 0x49c   : > { %2486 = vmatprep.subr.bf16.mxu1 %v3112_v17 }
 0x4a2   : > { %2477 = vmatmul.mubr.msk.bf16.vlgmr.msra.gmra.mrb[12].mxu1 %vm1238_vm5, %v1227_v54 }
 0x4a3   : > { %2488 = vmatprep.mubr.msk.bf16.mxu1 %vm3113_vm2, %v3112_v17 }
 0x55d   : > { %v1280_v62 = vpop.f32.mrb[0].mxu1 }
 0x55e   : > { %v1281_v63 = vadd.f32 %v1280_v62, %v1236_v61  ;;  %v2460_v0 = vpop.f32.mrb[1].mxu1 }
 0x55f   : > { %v1283_v1 = vpop.f32.mrb[2].mxu1 }
 0x560   : > { %v2461_v2 = vpop.f32.mrb[3].mxu1  ;;  %v1424_v3 = vsel %vm1238_vm5, %v1281_v63, -inf }
 0x561   : > { %1425 = vmax.xlane.f32.xlu1 %v1424_v3  ;;  %v1470_v3 = vpack.c.bf16 %v3734_v39, %v3734_v39  ;;  %v2689_v39 = vld [vmem:[%s3675_s12] sm:$0xff]  }
 0x565   : > { %v1326_v4 = vpop.f32.mrb[4].mxu1 }
 0x566   : > { %v1327_v5 = vadd.f32 %v1326_v4, %v1236_v61  ;;  %v2466_v6 = vpop.f32.mrb[5].mxu1 }
 0x567   : > { %v1329_v7 = vpop.f32.mrb[6].mxu1  ;;  %v2690_v6 = vld [vmem:[%s3675_s12 + $0x8] sm:$0xff]  }
 0x568   : > { %v2467_v8 = vpop.f32.mrb[7].mxu1  ;;  %v1427_v9 = vsel %vm1238_vm5, %v1327_v5, -inf }
 0x569   : > { %1428 = vmax.xlane.f32.xlu0 %v1427_v9 }
 0x56d   : > { %v1372_v10 = vpop.f32.mrb[8].mxu1 }
 0x56e   : > { %v1373_v11 = vadd.f32 %v1372_v10, %v1236_v61  ;;  %v2472_v12 = vpop.f32.mrb[9].mxu1 }
 0x56f   : > { %v1375_v13 = vpop.f32.mrb[10].mxu1 }
 0x570   : > { %v2473_v14 = vpop.f32.mrb[11].mxu1  ;;  %v1430_v15 = vsel %vm1238_vm5, %v1373_v11, -inf }
 0x571   : > { %1431 = vmax.xlane.f32.xlu1 %v1430_v15 }
 0x575   : > { %v1418_v16 = vpop.f32.mrb[12].mxu1 }
 0x576   : > { %v1419_v18 = vadd.f32 %v1418_v16, %v1236_v61  ;;  %v2478_v20 = vpop.f32.mrb[13].mxu1 }
 0x577   : > { %v1421_v21 = vpop.f32.mrb[14].mxu1 }
 0x578   : > { %v2479_v22 = vpop.f32.mrb[15].mxu1  ;;  %v1433_v23 = vsel %vm1238_vm5, %v1419_v18, -inf }
 0x579   : > { %1434 = vmax.xlane.f32.xlu1 %v1433_v23 }
 0x5ee   : > { %v1426_v24 = vpop.xlane.xlu1 %1425 }
 0x5ef   : > { %v1436_v25 = vsub.f32 %v1281_v63, %v1426_v24  ;;  %v1469_v63 = vpack.c.bf16 %v3732_v38, %v3732_v38 }
 0x5f1   : > { %v1440_v26 = vmul.f32 1.442695, %v1436_v25 }
 0x5f3   : > { %2697 = vpow2.f32 %v1440_v26  ;;  %v2385_v26 = vld [vmem:[%s4026_s19] ss:$0 sm:$0xff] }
 0x5f6   : > { %v1429_v27 = vpop.xlane.xlu0 %1428 }
 0x5f7   : > { %v1437_v28 = vsub.f32 %v1327_v5, %v1429_v27  ;;  %v1471_v5 = vpack.c.bf16 %v3736_v40, %v3736_v40 }
 0x5f9   : > { %v1442_v29 = vmul.f32 1.442695, %v1437_v28 }
 0x5fb   : > { %2699 = vpow2.f32 %v1442_v29 }
 0x5fd   : > { %v2698_v30 = vpop.eup %2697 }
 0x5fe   : > { %v1432_v31 = vpop.xlane.xlu1 %1431  ;;  %v1448_v32 = vsel %vm1238_vm5, %v2698_v30, 0.0 }
 0x5ff   : > { %v1438_v33 = vsub.f32 %v1373_v11, %v1432_v31  ;;  %1449 = vadd.xlane.f32.xlu1 %v1448_v32 }
 0x601   : > { %v1444_v34 = vmul.f32 1.442695, %v1438_v33 }
 0x603   : > { %2701 = vpow2.f32 %v1444_v34 }
 0x605   : > { %v2700_v35 = vpop.eup %2699 }
 0x606   : > { %v1435_v36 = vpop.xlane.xlu1 %1434  ;;  %v1451_v41 = vsel %vm1238_vm5, %v2700_v35, 0.0 }
 0x607   : > { %v1439_v42 = vsub.f32 %v1419_v18, %v1435_v36  ;;  %1452 = vadd.xlane.f32.xlu1 %v1451_v41 }
 0x609   : > { %v1446_v43 = vmul.f32 1.442695, %v1439_v42 }
 0x60b   : > { %2703 = vpow2.f32 %v1446_v43  ;;  %v2691_v43 = vld [vmem:[%s3680_s5] sm:$0xff]  }
 0x60d   : > { %v2702_v44 = vpop.eup %2701 }
 0x60e   : > { %v1454_v45 = vsel %vm1238_vm5, %v2702_v44, 0.0 }
 0x60f   : > { %1455 = vadd.xlane.f32.xlu1 %v1454_v45 }
 0x615   : > { %v2704_v46 = vpop.eup %2703 }
 0x616   : > { %v1457_v47 = vsel %vm1238_vm5, %v2704_v46, 0.0 }
 0x617   : > { %1458 = vadd.xlane.f32.xlu1 %v1457_v47 }
 0x68c   : > { %v1450_v48 = vpop.xlane.xlu1 %1449 }
 0x68d   : > { %2705 = vrcp.f32 %v1450_v48  ;;  %v2389_v48 = vld [vmem:[%s4027_s22] ss:$0 sm:$0xff] }
 0x694   : > { %v1453_v49 = vpop.xlane.xlu1 %1452 }
 0x695   : > { %2707 = vrcp.f32 %v1453_v49 }
 0x697   : > { %v2706_v50 = vpop.eup %2705 }
 0x698   : > { %v1464_v51 = vmul.f32 %v2706_v50, %v2698_v30  ;;  %v2390_v50 = vld [vmem:[%s4028_s20] ss:$0 sm:$0xff] }
 0x69a   : > { %v1472_v52 = vpack.c.bf16 %v1464_v51, %v1464_v51 }
 0x69c   : > { %v1456_v53 = vpop.xlane.xlu1 %1455  ;;  %v1480_v54 = vsel %vm1238_vm5, %v1472_v52, 0 }
 0x69d   : > { %2709 = vrcp.f32 %v1456_v53  ;;  %2481 = vmatpush3.bf16.xpose.msra.mxu0 %v1480_v54  ;;  %v2693_v54 = vld [vmem:[%s3685_s13] sm:$0xff]  }
 0x69e   : > { %2492 = vmatprep.subr.bf16.mxu0 %v3112_v17 }
 0x69f   : > { %v2708_v55 = vpop.eup %2707 }
 0x6a0   : > { %v1465_v56 = vmul.f32 %v2708_v55, %v2700_v35  ;;  %v2694_v55 = vld [vmem:[%s3685_s13 + $0x8] sm:$0xff]  }
 0x6a2   : > { %v1473_v58 = vpack.c.bf16 %v1465_v56, %v1465_v56  ;;  %v2695_v56 = vld [vmem:[%s3685_s13 + $0x10] sm:$0xff]  }
 0x6a4   : > { %2483 = vmatmul.mubr.msk.bf16.vlgmr.msra.gmra.mrb[4].mxu0 %vm1238_vm5, %v1468_v57  ;;  %v1459_v59 = vpop.xlane.xlu1 %1458  ;;  %v1526_v60 = vsel %vm1238_vm5, %v1473_v58, 0  ;;  %v2696_v57 = vld [vmem:[%s3685_s13 + $0x18] sm:$0xff]   ;;  %v2391_v58 = vld [vmem:[%s4029_s10] ss:$0 sm:$0xff]  ;;  %s4030_s13 = sld [smem:[#allocation28_spill]] }
 0x6a5   : > { %2711 = vrcp.f32 %v1459_v59  ;;  %2487 = vmatpush3.bf16.xpose.msra.mxu1 %v1526_v60  ;;  %2494 = vmatprep.mubr.msk.bf16.mxu0 %vm3113_vm2, %v3112_v17 }
 0x6a6   : > { %2498 = vmatprep.subr.bf16.mxu1 %v3112_v17 }
 0x6a7   : > { %v2710_v61 = vpop.eup %2709 }
 0x6a8   : > { %v1466_v62 = vmul.f32 %v2710_v61, %v2702_v44  ;;  %v2692_v44 = vld [vmem:[%s3680_s5 + $0x8] sm:$0xff]  }
 0x6aa   : > { %v1474_v0 = vpack.c.bf16 %v1466_v62, %v1466_v62  ;;  %s2195_s30 = scalar_lea.vmem [#allocation3], %s4030_s13  ;;  %p2404_p0 = scmp.ne.s32.totalorder %s4030_s13, 1 }
 0x6ab   : > { %s4033_s27 = sld [smem:[#allocation54_spill]] (!%p2404_p0)  ;;  %vm3115_vm8 = vmmov (!%p2404_p0), 0   ;;  %vm2058_vm9 = vcmask (!%p2404_p0), 256000  }
 0x6ac   : > { %2489 = vmatmul.mubr.msk.bf16.vlgmr.msra.gmra.mrb[16].mxu1 %vm1238_vm5, %v1469_v63  ;;  %v1572_v37 = vsel %vm1238_vm5, %v1474_v0, 0 }
 0x6ad   : > { %2493 = vmatpush3.bf16.xpose.msra.mxu0 %v1572_v37  ;;  %2500 = vmatprep.mubr.msk.bf16.mxu1 %vm3113_vm2, %v3112_v17 }
 0x6ae   : > { %2504 = vmatprep.subr.bf16.mxu0 %v3112_v17 }
 0x6af   : > { %v2712_v1 = vpop.eup %2711 }
 0x6b0   : > { %v1467_v2 = vmul.f32 %v2712_v1, %v2704_v46 }
 0x6b1   : > { %s4034_s17 = smov (!%p2404_p0), %s4033_s27 }
 0x6b2   : > { %v1475_v4 = vpack.c.bf16 %v1467_v2, %v1467_v2 }
 0x6b4   : > { %2495 = vmatmul.mubr.msk.bf16.vlgmr.msra.gmra.mrb[8].mxu0 %vm1238_vm5, %v1470_v3  ;;  %v1618_v38 = vsel %vm1238_vm5, %v1475_v4, 0 }
 0x6b5   : > { %2499 = vmatpush3.bf16.xpose.msra.mxu1 %v1618_v38  ;;  %2508 = vmatprep.mubr.msk.bf16.mxu0 %vm3113_vm2, %v3112_v17 }
 0x6b6   : > { %2512 = vmatprep.subr.bf16.mxu1 %v3112_v17  ;;  %2505 = vmatpush3.bf16.msra.mxu0 %v2689_v39 }
 0x6b7   : > { %2506 = vmatprep.subr.bf16.mxu0 %v3112_v17 }
 0x6ba   : > { %2507 = vmatpush3.bf16.msra.mxu0 %v2690_v6  ;;  %v2395_v6 = vld [vmem:[%s816_s15] ss:$0 sm:$0xff] }
 0x6bb   : > { %2520 = vmatprep.subr.bf16.mxu0 %v3112_v17 }
 0x6bc   : > { %2501 = vmatmul.mubr.msk.bf16.vlgmr.msra.gmra.mrb[20].mxu1 %vm1238_vm5, %v1471_v5 }
 0x6bd   : > { %2516 = vmatprep.mubr.msk.bf16.mxu1 %vm3113_vm2, %v3112_v17  ;;  %2513 = vmatpush3.bf16.msra.mxu1 %v2691_v43 }
 0x6be   : > { %2514 = vmatprep.subr.bf16.mxu1 %v3112_v17 }
 0x6c1   : > { %2515 = vmatpush3.bf16.msra.mxu1 %v2692_v44 }
 0x777   : > { %v1516_v7 = vpop.f32.mrb[4].mxu0 }
 0x778   : > { %1660 = vxpose.xlu1.b32.start [1/4] (short) (narrow) %v1516_v7, 8  ;;  %v2484_v8 = vpop.f32.mrb[5].mxu0 }
 0x779   : > { %v1519_v9 = vpop.f32.mrb[6].mxu0 }
 0x77a   : > { %v2485_v10 = vpop.f32.mrb[7].mxu0 }
 0x77f   : > { %v1562_v11 = vpop.f32.mrb[16].mxu1 }
 0x780   : > { %v2490_v40 = vpop.f32.mrb[17].mxu1  ;;  %1661 = vxpose.xlu1.b32.cont [2/4] (short) (narrow) %v1562_v11, 8 }
 0x781   : > { %v1565_v12 = vpop.f32.mrb[18].mxu1 }
 0x782   : > { %v2491_v13 = vpop.f32.mrb[19].mxu1 }
 0x787   : > { %v1608_v14 = vpop.f32.mrb[8].mxu0 }
 0x788   : > { %1662 = vxpose.xlu1.b32.cont [3/4] (short) (narrow) %v1608_v14, 8  ;;  %v2496_v15 = vpop.f32.mrb[9].mxu0 }
 0x789   : > { %v1611_v16 = vpop.f32.mrb[10].mxu0 }
 0x78a   : > { %v2497_v18 = vpop.f32.mrb[11].mxu0 }
 0x78f   : > { %v1654_v20 = vpop.f32.mrb[20].mxu1 }
 0x790   : > { %v2502_v21 = vpop.f32.mrb[21].mxu1  ;;  %1663 = vxpose.xlu1.b32.end [4/4] (short) (narrow) %v1654_v20, 8 }
 0x791   : > { %v1657_v22 = vpop.f32.mrb[22].mxu1 }
 0x792   : > { %v2503_v23 = vpop.f32.mrb[23].mxu1 }
 0x804   : > { %v1676_v24 = vpop.trf.xlu1 }
 0x805   : > { %v1692_v25 = vpack.c.bf16 %v1676_v24, %v1676_v24  ;;  %v2401_v24 = vld [vmem:[%s944_s21] ss:$0 sm:$0xff] }
 0x807   : > { %2509 = vmatmul.mubr.msk.bf16.vlgmr.msra.gmra.mrb[12].mxu0 %vm1017_vm3, %v1692_v25 }
 0x808   : > { %2528 = vmatprep.mubr.msk.bf16.mxu0 %vm3113_vm2, %v3112_v17  ;;  %2521 = vmatpush3.bf16.msra.mxu0 %v2693_v54 }
 0x809   : > { %2522 = vmatprep.subr.bf16.mxu0 %v3112_v17 }
 0x80c   : > { %2523 = vmatpush3.bf16.msra.mxu0 %v2694_v55 }
 0x80d   : > { %2524 = vmatprep.subr.bf16.mxu0 %v3112_v17 }
 0x810   : > { %2525 = vmatpush3.bf16.msra.mxu0 %v2695_v56 }
 0x811   : > { %2526 = vmatprep.subr.bf16.mxu0 %v3112_v17 }
 0x814   : > { %2527 = vmatpush3.bf16.msra.mxu0 %v2696_v57 }
 0x8da   : > { %v1753_v27 = vpop.f32.mrb[12].mxu0 }
 0x8db   : > { %v1754_v28 = vadd.f32 %v2385_v26, %v1753_v27  ;;  %v2510_v29 = vpop.f32.mrb[13].mxu0  ;;  %v2402_v26 = vld [vmem:[%s947_s6] ss:$0 sm:$0xff]  ;;  %s4035_s6 = sld [smem:[#allocation55_spill]] (!%p2404_p0) }
 0x8dc   : > { %v1756_v30 = vpop.f32.mrb[14].mxu0  ;;  %v2719_v29 = vld [vmem:[%s4033_s27] sm:$0xff] (!%p2404_p0)  }
 0x8dd   : > { %v2511_v31 = vpop.f32.mrb[15].mxu0  ;;  %v1759_v32 = vadd.f32 %v1754_v28, %v3715_v19  ;;  %v3114_v30 = vmov (!%p2404_p0), 0.0  }
 0x8de   : > { %2532 = vmatprep.subr.bf16.mxu0 (!%p2404_p0), %v3114_v30  ;;  %v2720_v31 = vld [vmem:[%s4034_s17 + $0x8] sm:$0xff] (!%p2404_p0)  }
 0x8df   : > { %v1762_v33 = vsel %vm1017_vm3, %v1759_v32, 0.0 }
 0x8e0   : > { %1763 = vadd.xlane.f32.xlu0 %v1762_v33 }
 0x96d   : > { %v1764_v34 = vpop.xlane.xlu0 %1763 }
 0x96e   : > { %v1766_v35 = vmul.f32 0.03125, %v1764_v34  ;;  %v2405_v34 = vld [vmem:[%s4035_s6] ss:$0 sm:$0xff] (!%p2404_p0) }
 0x970   : > { %v1767_v36 = vsub.f32 %v1759_v32, %v1766_v35 }
 0x972   : > { %v1768_v41 = vmul.f32 %v1767_v36, %v1767_v36 }
 0x974   : > { %v1769_v42 = vsel %vm1017_vm3, %v1768_v41, 0.0 }
 0x975   : > { %1770 = vadd.xlane.f32.xlu0 %v1769_v42 }
 0xa02   : > { %v1771_v19 = vpop.xlane.xlu0 %1770 }
 0xa03   : > { %v1772_v45 = vmul.f32 0.03125, %v1771_v19 }
 0xa05   : > { %v1773_v46 = vadd.f32 1e-05, %v1772_v45 }
 0xa07   : > { %2713 = vrsqrt.f32 %v1773_v46 }
 0xa11   : > { %v2714_v47 = vpop.eup %2713 }
 0xa12   : > { %v1775_v49 = vmul.f32 %v2714_v47, %v1767_v36 }
 0xa14   : > { %v1782_v51 = vmul.f32 %v2389_v48, %v1775_v49 }
 0xa16   : > { %v1789_v52 = vadd.f32 %v2390_v50, %v1782_v51 }
 0xa18   : > { %v1790_v53 = vpack.c.bf16 %v1789_v52, %v1789_v52 }
 0xa1a   : > { %2517 = vmatmul.mubr.msk.bf16.vlgmr.msra.gmra.mrb[24].mxu1 %vm1017_vm3, %v1790_v53 }
 0xaed   : > { %v1851_v59 = vpop.f32.mrb[24].mxu1 }
 0xaee   : > { %v1852_v60 = vadd.f32 %v2391_v58, %v1851_v59  ;;  %v2518_v61 = vpop.f32.mrb[25].mxu1 }
 0xaef   : > { %v1854_v62 = vpop.f32.mrb[26].mxu1 }
 0xaf0   : > { %v1857_v63 = vmul.f32 %v1852_v60, %v1852_v60  ;;  %v2519_v0 = vpop.f32.mrb[27].mxu1 }
 0xaf2   : > { %v1858_v37 = vmul.f32 %v1857_v63, %v1852_v60 }
 0xaf4   : > { %v1859_v1 = vmul.f32 0.044715, %v1858_v37 }
 0xaf6   : > { %v1860_v2 = vadd.f32 %v1859_v1, %v1852_v60 }
 0xaf8   : > { %v1861_v3 = vmul.f32 0.7978846, %v1860_v2 }
 0xafa   : > { %2715 = vtanh.f32 %v1861_v3 }
 0xb04   : > { %v2716_v4 = vpop.eup %2715 }
 0xb05   : > { %v1863_v38 = vadd.f32 1.0, %v2716_v4 }
 0xb07   : > { %v1864_v5 = vmul.f32 0.5, %v1863_v38 }
 0xb09   : > { %v1865_v17 = vmul.f32 %v1864_v5, %v1852_v60 }
 0xb0b   : > { %v1866_v39 = vpack.c.bf16 %v1865_v17, %v1865_v17 }
 0xb0d   : > { %2529 = vmatmul.mubr.msk.bf16.vlgmr.msra.gmra.mrb[16].mxu0 %vm1906_vm6, %v1866_v39 }
 0xb0e   : > { %2533 = vmatpush3.bf16.msra.mxu0 (!%p2404_p0), %v2719_v29  ;;  %2536 = vmatprep.mubr.msk.bf16.mxu0 (!%p2404_p0), %vm3115_vm8, %v3114_v30 }
 0xb0f   : > { %2534 = vmatprep.subr.bf16.mxu0 (!%p2404_p0), %v3114_v30 }
 0xb12   : > { %2535 = vmatpush3.bf16.msra.mxu0 (!%p2404_p0), %v2720_v31 }
 0xbe0   : > { %v1944_v7 = vpop.f32.mrb[16].mxu0 }
 0xbe1   : > { %v1945_v8 = vadd.f32 %v2395_v6, %v1944_v7  ;;  %v2530_v9 = vpop.f32.mrb[17].mxu0 }
 0xbe2   : > { %v1947_v10 = vpop.f32.mrb[18].mxu0 }
 0xbe3   : > { %v2531_v11 = vpop.f32.mrb[19].mxu0  ;;  %v1950_v40 = vadd.f32 %v1945_v8, %v1789_v52 }
 0xbe5   : > { %v1953_v12 = vsel %vm1017_vm3, %v1950_v40, 0.0 }
 0xbe6   : > { %1954 = vadd.xlane.f32.xlu0 %v1953_v12 }
 0xc73   : > { %v1955_v13 = vpop.xlane.xlu0 %1954 }
 0xc74   : > { %v1956_v14 = vmul.f32 0.03125, %v1955_v13 }
 0xc76   : > { %v1957_v15 = vsub.f32 %v1950_v40, %v1956_v14 }
 0xc78   : > { %v1958_v16 = vmul.f32 %v1957_v15, %v1957_v15 }
 0xc7a   : > { %v1959_v18 = vsel %vm1017_vm3, %v1958_v16, 0.0 }
 0xc7b   : > { %1960 = vadd.xlane.f32.xlu0 %v1959_v18 }
 0xd08   : > { %v1961_v20 = vpop.xlane.xlu0 %1960 }
 0xd09   : > { %v1962_v21 = vmul.f32 0.03125, %v1961_v20 }
 0xd0b   : > { %v1963_v22 = vadd.f32 1e-05, %v1962_v21 }
 0xd0d   : > { %2717 = vrsqrt.f32 %v1963_v22 }
 0xd17   : > { %v2718_v23 = vpop.eup %2717 }
 0xd18   : > { %v1965_v25 = vmul.f32 %v2718_v23, %v1957_v15 }
 0xd19   : > { %1988 = sbr.rel (%p2404_p0) target bundleno = 3595 (0xe0b), region = 136 }
 0xd1a   : > { %v1972_v27 = vmul.f32 %v2401_v24, %v1965_v25 }
 0xd1c   : > { %v1979_v28 = vadd.f32 %v2402_v26, %v1972_v27 }
 0xd1e   : > { %1980 = vst.msk [vmem:[#allocation2] sm:$0xff] %vm1017_vm3, %v1979_v28 }
 0xd1f   : > { %2403 = vst.msk [vmem:[%s2195_s30 + $0x1] sm:$0x1] %vm1983_vm7, %v1979_v28 }
 0xd26   : > { %v1989_v32 = vld [vmem:[#allocation3] sm:$0x7] }
 0xd27   : > { %v1990_v33 = vpack.c.bf16 %v1989_v32, %v1989_v32 }
 0xd29   : > { %2537 = vmatmul.mubr.msk.bf16.vlgmr.msra.gmra.mrb[0].mxu0 %vm1017_vm3, %v1990_v33 }
 0xdfc   : > { %v2051_v35 = vpop.f32.mrb[0].mxu0 }
 0xdfd   : > { %v2052_v36 = vadd.f32 %v2405_v34, %v2051_v35  ;;  %v2538_v41 = vpop.f32.mrb[1].mxu0 }
 0xdfe   : > { %v2054_v42 = vpop.f32.mrb[2].mxu0 }
 0xdff   : > { %2721 = vtanh.f32 %v2052_v36  ;;  %v2539_v43 = vpop.f32.mrb[3].mxu0 }
 0xe09   : > { %v2722_v44 = vpop.eup %2721 }
 0xe0a   : > { %2059 = vst.msk [vmem:[%s3698_s26] sm:$0x7] %vm2058_vm9, %v2722_v44 }
 0xe0b PF: > { %s43_s2 = sadd.s32 1, %s3101_s2   ;;  %s4036_s27 = sld [smem:[#allocation24_spill]] }
 0xe0c   : > { %p40_p5 = scmp.ge.s32.totalorder %s43_s2, 6   ;;  %s4037_s28 = sld [smem:[#allocation25_spill]] }
 0xe0d   : > { %s4038_s29 = sld [smem:[#allocation35_spill]]  ;;  %s4039_s30 = sld [smem:[#allocation26_spill]] }
 0xe0e   : > { %s4040_s0 = sld [smem:[#allocation27_spill]]  ;;  %s4041_s19 = sld [smem:[#allocation37_spill]] }
 0xe0f   : > { %s4042_s1 = sld [smem:[#allocation30_spill]]  ;;  %s4043_s20 = sld [smem:[#allocation31_spill]] }
 0xe10   : > { %s4044_s21 = sld [smem:[#allocation34_spill]]  ;;  %s4045_s22 = sld [smem:[#allocation36_spill]] }
 0xe11   :  { %42 = sbr.rel (!%p40_p5) target bundleno = 35 (0x23), region = 248 }
 0xe18   :  { %2079 = vsyncpa [#allocation5], 1 }
 0xe19   :  { %2081 = vsyncpa [#allocation5 + $0x1], 1 }
 0xe1a   :  { %2082 = vsyncpa [#allocation7], 1 }
 0xe1b   :  { %2084 = vsyncpa [#allocation7 + $0x1], 1 }
 0xe1c   :  { %2085 = vsyncpa [#allocation10], 1 }
 0xe1d   :  { %2087 = vsyncpa [#allocation10 + $0x1], 1 }
 0xe1e   :  { %2088 = vsyncpa [#allocation13], 1 }
 0xe1f   :  { %2090 = vsyncpa [#allocation13 + $0x1], 1 }
 0xe20   :  { %2091 = vsyncpa [#allocation16], 1 }
 0xe21   :  { %2093 = vsyncpa [#allocation16 + $0x1], 1 }

</bundles_post_ra>
